<compile_context>
chip_gen: v5e
topology: v5e:2x2
jax: 0.10.0
libtpu: 0.0.40
codegen_flags: <defaults>
</compile_context>

<pallas_src>
import numpy as np
import jax
import jax.numpy as jnp
from jax.experimental import pallas as pl
from jax.experimental.pallas import tpu as pltpu

LATENT_DIM = 256
HID = LATENT_DIM
EMB = 2 * HID                 # 512
IN_DIM = EMB + 2              # 514
NUM_HEADS = 2
HEAD_DIM = EMB // NUM_HEADS   # 256
MAX_TM = 512                  # max row tile for the MLP kernels
VMEM_LIMIT = 32 * 1024 * 1024

_VMEM_SPEC = pl.BlockSpec(memory_space=pltpu.MemorySpace.VMEM)


def _elu(x):
    # F.elu with alpha=1 (computed in f32)
    return jnp.where(x > 0, x, jnp.exp(x) - 1.0)


# ----------------------------------------------------------------------------
# Pallas kernels
# ----------------------------------------------------------------------------
def _phi1_kernel(x_ref, w1, b1, w2, b2, w3, b3, w4, b4, o_ref):
    # 514 -> 256 -> 256 -> 256 -> 512 with the double-ELU on layer 2.
    x = x_ref[...].astype(jnp.bfloat16)
    h = _elu(jnp.dot(x, w1[...], preferred_element_type=jnp.float32) + b1[...])
    h = _elu(_elu(jnp.dot(h.astype(jnp.bfloat16), w2[...],
                          preferred_element_type=jnp.float32) + b2[...]))
    h = _elu(jnp.dot(h.astype(jnp.bfloat16), w3[...],
                     preferred_element_type=jnp.float32) + b3[...])
    out = jnp.dot(h.astype(jnp.bfloat16), w4[...],
                  preferred_element_type=jnp.float32) + b4[...]
    o_ref[...] = out.astype(o_ref.dtype)        # key1 stored as bf16


def _phi2_alt_kernel(k2_ref, key1_ref, kbar1_ref, invc_ref,
                     w1, b1, w2, b2, w3, b3, o_ref):
    # fused: alt_val = key2 + kbar1 - key1 / |group|, then phi2 MLP.
    alt = (k2_ref[...] + kbar1_ref[...]
           - key1_ref[...].astype(jnp.float32) * invc_ref[...])
    h = _elu(jnp.dot(alt.astype(jnp.bfloat16), w1[...],
                     preferred_element_type=jnp.float32) + b1[...])
    h = _elu(jnp.dot(h.astype(jnp.bfloat16), w2[...],
                     preferred_element_type=jnp.float32) + b2[...])
    # last layer is zero-padded to 128 output lanes (host slices [:, :2])
    o_ref[...] = jnp.dot(h.astype(jnp.bfloat16), w3[...],
                         preferred_element_type=jnp.float32) + b3[...]


def _attn_g_kernel(xg_ref, lens_ref,
                   wqkv, bqkv, wo, bo,
                   gw1, gb1, gw2, gb2, gw3, gb3, gw4, gb4,
                   mean_ref, qjt_ref):
    # One grid step = n_g groups of (padded) size maxg, gathered host-side into
    # a (n_g*maxg, 512) bf16 slab.  Q/K/V projections are fused into a single
    # (512,1536) matmul (1/sqrt(HEAD_DIM) folded into wqkv/bqkv); the softmax
    # is batched per group so score/exp work is only O(n_g*maxg^2); the masked
    # per-group mean and the g-MLP are fused into the epilogue.
    n_g = mean_ref.shape[0]            # groups per grid step
    nrow = xg_ref.shape[0]             # n_g * maxg
    maxg = nrow // n_g

    x = xg_ref[...]                                              # bf16 (nrow, 512)
    qkv = jnp.dot(x, wqkv[...], preferred_element_type=jnp.float32) + bqkv[...]

    lens = lens_ref[...]                                         # (n_g, 1) int32
    pos = jax.lax.broadcasted_iota(jnp.int32, (n_g, maxg), 1)    # member position
    kmask = pos < lens                                           # valid keys
    inv_len = 1.0 / jnp.maximum(lens, 1).astype(jnp.float32)     # (n_g, 1)

    heads = []
    for h in range(NUM_HEADS):
        q = qkv[:, h * HEAD_DIM:(h + 1) * HEAD_DIM]
        k = qkv[:, EMB + h * HEAD_DIM:EMB + (h + 1) * HEAD_DIM]
        v = qkv[:, 2 * EMB + h * HEAD_DIM:2 * EMB + (h + 1) * HEAD_DIM]
        q = q.astype(jnp.bfloat16).reshape(n_g, maxg, HEAD_DIM)
        k = k.astype(jnp.bfloat16).reshape(n_g, maxg, HEAD_DIM)
        v = v.astype(jnp.bfloat16).reshape(n_g, maxg, HEAD_DIM)
        s = jnp.einsum('gqd,gkd->gqk', q, k,
                       preferred_element_type=jnp.float32)       # (n_g, maxg, maxg)
        s = jnp.where(kmask[:, None, :], s, -1e30)
        s = s - jnp.max(s, axis=-1, keepdims=True)
        e = jnp.exp(s)
        p = e * pl.reciprocal(jnp.sum(e, axis=-1, keepdims=True), approx=True)
        pv = jnp.einsum('gqk,gkd->gqd', p.astype(jnp.bfloat16), v,
                        preferred_element_type=jnp.float32)
        heads.append(pv.reshape(nrow, HEAD_DIM))
    attn = jnp.concatenate(heads, axis=-1).astype(jnp.bfloat16)  # (nrow, 512)
    y = jnp.dot(attn, wo[...], preferred_element_type=jnp.float32) + bo[...]

    # ---- masked per-group mean (padded member rows are excluded) ----
    qmask = kmask.astype(jnp.float32)[:, :, None]                # (n_g, maxg, 1)
    y3 = y.reshape(n_g, maxg, EMB)
    mean = jnp.sum(y3 * qmask, axis=1) * inv_len                 # (n_g, 512)
    mean_ref[...] = mean

    # ---- fused g-MLP: 512 -> 256 -> 256 -> 256 -> 1 (last layer lane-padded)
    h1 = _elu(jnp.dot(mean.astype(jnp.bfloat16), gw1[...],
                      preferred_element_type=jnp.float32) + gb1[...])
    h2 = _elu(jnp.dot(h1.astype(jnp.bfloat16), gw2[...],
                      preferred_element_type=jnp.float32) + gb2[...])
    h3 = _elu(jnp.dot(h2.astype(jnp.bfloat16), gw3[...],
                      preferred_element_type=jnp.float32) + gb3[...])
    qjt_ref[...] = jnp.dot(h3.astype(jnp.bfloat16), gw4[...],
                           preferred_element_type=jnp.float32) + gb4[...]


# ----------------------------------------------------------------------------
# Pallas wrappers
# ----------------------------------------------------------------------------
def _ceil_to(n, m):
    return int(-(-n // m) * m)


def _row_tile(n):
    return min(MAX_TM, _ceil_to(n, 8))


def phi1_apply(pp, x):
    n = x.shape[0]
    tm = _row_tile(n)
    ws = [pp[k] for k in ('w1', 'b1', 'w2', 'b2', 'w3', 'b3', 'w4', 'b4')]
    return pl.pallas_call(
        _phi1_kernel,
        out_shape=jax.ShapeDtypeStruct((n, EMB), jnp.bfloat16),
        grid=(pl.cdiv(n, tm),),
        in_specs=[pl.BlockSpec((tm, IN_DIM), lambda i: (i, 0))] + [_VMEM_SPEC] * 8,
        out_specs=pl.BlockSpec((tm, EMB), lambda i: (i, 0)),
        compiler_params=pltpu.CompilerParams(
            dimension_semantics=("parallel",), vmem_limit_bytes=VMEM_LIMIT),
    )(x, *ws)


def phi2_alt_apply(pp, k2, key1, kbar1, inv_count):
    n = k2.shape[0]
    tm = _row_tile(n)
    ws = [pp[k] for k in ('w1', 'b1', 'w2', 'b2', 'w3', 'b3')]
    out = pl.pallas_call(
        _phi2_alt_kernel,
        out_shape=jax.ShapeDtypeStruct((n, 128), jnp.float32),
        grid=(pl.cdiv(n, tm),),
        in_specs=[pl.BlockSpec((tm, EMB), lambda i: (i, 0)),
                  pl.BlockSpec((tm, EMB), lambda i: (i, 0)),
                  pl.BlockSpec((tm, EMB), lambda i: (i, 0)),
                  pl.BlockSpec((tm, 1), lambda i: (i, 0))] + [_VMEM_SPEC] * 6,
        out_specs=pl.BlockSpec((tm, 128), lambda i: (i, 0)),
        compiler_params=pltpu.CompilerParams(
            dimension_semantics=("parallel",), vmem_limit_bytes=VMEM_LIMIT),
    )(k2, key1, kbar1, inv_count, *ws)
    return out[:, :2]


def _choose_gb(ng, maxg):
    # groups per grid step: target ~256 member rows per step (fills the
    # 256-wide MXU M dim on v6e/v7x), group block a multiple of 8, >= 8.
    # Never fall back to "all groups in one step" (VMEM cliff).
    gb = max(8, ((256 // max(maxg, 1)) // 8) * 8)
    return gb


def attn_g_apply(attn_p, g_p, xg, lens_g, gb, maxg):
    gpad = int(lens_g.shape[0])
    assert gpad % gb == 0
    nrow = gb * maxg
    w_in = [attn_p['wqkv'], attn_p['bqkv'], attn_p['wo'], attn_p['bo'],
            g_p['w1'], g_p['b1'], g_p['w2'], g_p['b2'],
            g_p['w3'], g_p['b3'], g_p['w4'], g_p['b4']]
    mean, qjt = pl.pallas_call(
        _attn_g_kernel,
        out_shape=(jax.ShapeDtypeStruct((gpad, EMB), jnp.float32),
                   jax.ShapeDtypeStruct((gpad, 128), jnp.float32)),
        grid=(gpad // gb,),
        in_specs=[pl.BlockSpec((nrow, EMB), lambda i: (i, 0)),   # gathered slab (bf16)
                  pl.BlockSpec((gb, 1), lambda i: (i, 0)),       # group lengths (i32)
                  ] + [_VMEM_SPEC] * len(w_in),
        out_specs=(pl.BlockSpec((gb, EMB), lambda i: (i, 0)),
                   pl.BlockSpec((gb, 128), lambda i: (i, 0))),
        compiler_params=pltpu.CompilerParams(
            dimension_semantics=("parallel",), vmem_limit_bytes=VMEM_LIMIT),
    )(xg, lens_g, *w_in)
    return mean, qjt


# ----------------------------------------------------------------------------
# Parameters (deterministic synthetic init) + kernel-side prep (bf16 / fusion)
# ----------------------------------------------------------------------------
def _init_linear(key, fan_in, fan_out):
    kw, kb = jax.random.split(key)
    bound = 1.0 / np.sqrt(fan_in)
    w = jax.random.uniform(kw, (fan_in, fan_out), jnp.float32, -bound, bound)
    b = jax.random.uniform(kb, (1, fan_out), jnp.float32, -bound, bound)
    return w, b


def init_params(key):
    keys = jax.random.split(key, 15)
    phi1 = {}
    for i, (fi, fo) in enumerate([(IN_DIM, HID), (HID, HID), (HID, HID), (HID, EMB)]):
        phi1[f'w{i+1}'], phi1[f'b{i+1}'] = _init_linear(keys[i], fi, fo)
    g = {}
    for i, (fi, fo) in enumerate([(EMB, HID), (HID, HID), (HID, HID), (HID, 1)]):
        g[f'w{i+1}'], g[f'b{i+1}'] = _init_linear(keys[4 + i], fi, fo)
    phi2 = {}
    for i, (fi, fo) in enumerate([(EMB, HID), (HID, HID), (HID, 2)]):
        phi2[f'w{i+1}'], phi2[f'b{i+1}'] = _init_linear(keys[8 + i], fi, fo)
    attn = {}
    for i, n in enumerate(['q', 'k', 'v', 'o']):
        attn[f'w{n}'], attn[f'b{n}'] = _init_linear(keys[11 + i], EMB, EMB)
    return {'phi1': phi1, 'g': g, 'phi2': phi2, 'attn': attn}


def prep_params(params):
    """bf16 weights, f32 biases; fused (pre-scaled) QKV; lane-padded tiny heads."""
    def mlp(p, nlayers, pad_last_to=None):
        out = {}
        for i in range(1, nlayers + 1):
            w, b = p[f'w{i}'], p[f'b{i}']
            if i == nlayers and pad_last_to is not None:
                w = jnp.pad(w, ((0, 0), (0, pad_last_to - w.shape[1])))
                b = jnp.pad(b, ((0, 0), (0, pad_last_to - b.shape[1])))
            out[f'w{i}'] = w.astype(jnp.bfloat16)
            out[f'b{i}'] = b.astype(jnp.float32)
        return out

    a = params['attn']
    scale = 1.0 / np.sqrt(HEAD_DIM)
    wqkv = jnp.concatenate([a['wq'] * scale, a['wk'], a['wv']], axis=1)
    bqkv = jnp.concatenate([a['bq'] * scale, a['bk'], a['bv']], axis=1)
    attn_k = {'wqkv': wqkv.astype(jnp.bfloat16),
              'bqkv': bqkv.astype(jnp.float32),
              'wo': a['wo'].astype(jnp.bfloat16),
              'bo': a['bo'].astype(jnp.float32)}
    return {'phi1': mlp(params['phi1'], 4),
            'g': mlp(params['g'], 4, pad_last_to=128),
            'phi2': mlp(params['phi2'], 3, pad_last_to=128),
            'attn': attn_k}


# ----------------------------------------------------------------------------
# QJoint forward (Pallas kernels + host glue for variable-length grouping)
# ----------------------------------------------------------------------------
def qjoint_forward(kp, flat_pair_enc, flat_pair_encA,
                   batch_pairs, batch_groups, n_pairs_list):
    n_total = int(flat_pair_enc.shape[0])
    key1_all = phi1_apply(kp['phi1'], flat_pair_encA)              # (N, 512) bf16

    # host-side bookkeeping (pair2idx / group membership), matches torch loop.
    # TODO(synk): the per-episode dict/list bookkeeping stays in Python.
    group_rows, groups_per_ep = [], []
    row_group = np.zeros(n_total, dtype=np.int32)
    off, gid = 0, 0
    for pairs, groups, npairs in zip(batch_pairs, batch_groups, n_pairs_list):
        pair2idx = {p: i for i, p in enumerate(pairs)}
        groups_per_ep.append(len(groups))
        for grp in groups:
            rows = np.array([off + pair2idx[pp] for pp in grp], dtype=np.int32)
            group_rows.append(rows)
            row_group[rows] = gid
            gid += 1
        off += npairs
    n_groups = gid
    lengths_np = np.array([len(r) for r in group_rows], dtype=np.int32)
    maxg = _ceil_to(int(lengths_np.max()), 8)
    gb = _choose_gb(n_groups, maxg)
    gpad = _ceil_to(n_groups, gb)

    # padded member slots gather row 0 (valid data; masked out by the length
    # mask inside the kernel); padded groups get length 1 and their outputs
    # are sliced away via [:n_groups] below.
    gather_idx = np.zeros((gpad, maxg), dtype=np.int32)
    lens_pad = np.ones((gpad,), dtype=np.int32)
    for i, rows in enumerate(group_rows):
        gather_idx[i, :len(rows)] = rows
        lens_pad[i] = len(rows)

    # hoisted gather: one XLA gather produces the (gpad*maxg, 512) bf16 slab,
    # streamed into the attention kernel as a pipelined BlockSpec input.
    xg = jnp.take(key1_all, jnp.asarray(gather_idx.reshape(-1)), axis=0)
    lens_g = jnp.asarray(lens_pad[:, None])                       # (gpad, 1) i32

    key1_mean_pad, qjt_pad = attn_g_apply(kp['attn'], kp['g'], xg, lens_g, gb, maxg)
    key1_mean = key1_mean_pad[:n_groups]                          # (G, 512) f32
    qjt_all = qjt_pad[:n_groups, :1]                              # (G, 1)

    counts_per_row = lengths_np[row_group].astype(np.float32)     # (N,)
    inv_count = jnp.asarray(1.0 / counts_per_row)[:, None]        # (N, 1)
    kbar1 = jnp.take(key1_mean, jnp.asarray(row_group), axis=0)   # (N, 512) f32
    alt_q = phi2_alt_apply(kp['phi2'], flat_pair_enc, key1_all,
                           kbar1, inv_count)                      # (N, 2)

    out_qjt, g_off = [], 0
    for ng_e in groups_per_ep:
        out_qjt.append(qjt_all[g_off:g_off + ng_e])               # (n_groups_i, 1)
        g_off += ng_e
    out_qjt_alt = [alt_q[jnp.asarray(rows)] for rows in group_rows]  # (|g|, 2)
    return out_qjt, out_qjt_alt


# ----------------------------------------------------------------------------
# Pure-JAX f32 reference (mirrors the PyTorch forward) for verification
# ----------------------------------------------------------------------------
def _linear(x, w, b):
    return x @ w + b


def _phi1_ref(p, x):
    h = _elu(_linear(x, p['w1'], p['b1']))
    h = _elu(_elu(_linear(h, p['w2'], p['b2'])))
    h = _elu(_linear(h, p['w3'], p['b3']))
    return _linear(h, p['w4'], p['b4'])


def _g_ref(p, x):
    h = _elu(_linear(x, p['w1'], p['b1']))
    h = _elu(_linear(h, p['w2'], p['b2']))
    h = _elu(_linear(h, p['w3'], p['b3']))
    return _linear(h, p['w4'], p['b4'])


def _phi2_ref(p, x):
    h = _elu(_linear(x, p['w1'], p['b1']))
    h = _elu(_linear(h, p['w2'], p['b2']))
    return _linear(h, p['w3'], p['b3'])


def _attn_ref(p, x):
    q = x @ p['wq'] + p['bq']
    k = x @ p['wk'] + p['bk']
    v = x @ p['wv'] + p['bv']
    outs = []
    for h in range(NUM_HEADS):
        sl = slice(h * HEAD_DIM, (h + 1) * HEAD_DIM)
        s = (q[:, sl] / np.sqrt(HEAD_DIM)) @ k[:, sl].T
        pmat = jax.nn.softmax(s, axis=-1)
        outs.append(pmat @ v[:, sl])
    y = jnp.concatenate(outs, axis=-1) @ p['wo'] + p['bo']
    return jnp.mean(y, axis=0)


def qjoint_ref(params, flat_pair_enc, flat_pair_encA,
               batch_pairs, batch_groups, n_pairs_list):
    out_qjt, out_alt = [], []
    off = 0
    for pairs, groups, npairs in zip(batch_pairs, batch_groups, n_pairs_list):
        pairA = flat_pair_encA[off:off + npairs]
        key2 = flat_pair_enc[off:off + npairs]
        key1 = _phi1_ref(params['phi1'], pairA)
        pair2idx = {p: i for i, p in enumerate(pairs)}
        gi = np.zeros(npairs, dtype=np.int32)
        for g_id, grp in enumerate(groups):
            for pp in grp:
                gi[pair2idx[pp]] = g_id
        key1_mean = jnp.stack([
            _attn_ref(params['attn'],
                      key1[np.array([pair2idx[pp] for pp in grp])])
            for grp in groups], axis=0)
        q_jt = _g_ref(params['g'], key1_mean)[:, 0]
        counts = np.array([len(grp) for grp in groups], dtype=np.float32)
        cpp = jnp.asarray(counts[gi])[:, None]
        kbar1 = key1_mean[jnp.asarray(gi)]
        alt = key2 + kbar1 - key1 / cpp
        alt_q = _phi2_ref(params['phi2'], alt)
        out_qjt.append(q_jt[:, None])
        for grp in groups:
            out_alt.append(alt_q[np.array([pair2idx[pp] for pp in grp])])
        off += npairs
    return out_qjt, out_alt


# ----------------------------------------------------------------------------
if __name__ == "__main__":
    key = jax.random.PRNGKey(0)
    kseed, ka, kb = jax.random.split(key, 3)
    params = init_params(kseed)          # f32 "torch-like" params (reference)
    kparams = prep_params(params)        # bf16 / fused / padded kernel params

    # small synthetic batch: 2 episodes, 9 pairs total, 4 groups
    batch_pairs = [
        [(0, 1), (0, 2), (1, 2), (0, 3), (1, 3)],
        [(0, 1), (0, 2), (1, 2), (2, 3)],
    ]
    batch_groups = [
        [[(0, 1), (0, 2), (1, 2)], [(0, 3), (1, 3)]],
        [[(0, 1), (2, 3)], [(0, 2), (1, 2)]],
    ]
    n_pairs_list = [5, 4]
    n_total = sum(n_pairs_list)

    flat_pair_encA = jax.random.normal(ka, (n_total, IN_DIM), jnp.float32)
    flat_pair_enc = jax.random.normal(kb, (n_total, EMB), jnp.float32)

    out_qjt, out_alt = qjoint_forward(kparams, flat_pair_enc, flat_pair_encA,
                                      batch_pairs, batch_groups, n_pairs_list)
    jax.block_until_ready(out_qjt)
    jax.block_until_ready(out_alt)

    ref_qjt, ref_alt = qjoint_ref(params, flat_pair_enc, flat_pair_encA,
                                  batch_pairs, batch_groups, n_pairs_list)
    # bf16 matmuls / bf16 key1 storage + approx reciprocal vs f32 reference
    for a, b in zip(out_qjt, ref_qjt):
        np.testing.assert_allclose(np.asarray(a), np.asarray(b), atol=5e-2, rtol=5e-2)
    for a, b in zip(out_alt, ref_alt):
        np.testing.assert_allclose(np.asarray(a), np.asarray(b), atol=5e-2, rtol=5e-2)

    print("KERNEL_OK")
</pallas_src>

<mosaic_0001>
module attributes {stable_mosaic.version = 11 : i64} {
  func.func @_phi1_kernel(%arg0: i32, %arg1: memref<16x514xf32, #tpu.memory_space<vmem>>, %arg2: memref<514x256xbf16, #tpu.memory_space<vmem>>, %arg3: memref<1x256xf32, #tpu.memory_space<vmem>>, %arg4: memref<256x256xbf16, #tpu.memory_space<vmem>>, %arg5: memref<1x256xf32, #tpu.memory_space<vmem>>, %arg6: memref<256x256xbf16, #tpu.memory_space<vmem>>, %arg7: memref<1x256xf32, #tpu.memory_space<vmem>>, %arg8: memref<256x512xbf16, #tpu.memory_space<vmem>>, %arg9: memref<1x512xf32, #tpu.memory_space<vmem>>, %arg10: memref<16x512xbf16, #tpu.memory_space<vmem>>) attributes {dimension_semantics = [#tpu.dimension_semantics<parallel>], iteration_bounds = array<i64: 1>, scalar_prefetch = 0 : i64, scratch_operands = 0 : i64, tpu.core_type = #tpu.core_type<tc>, window_params = [{transform_indices = @transform_0, window_bounds = array<i64: 16, 514>}, {pipeline_mode = #tpu.pipeline_mode<synchronous>, transform_indices = @transform_1, window_bounds = array<i64: 514, 256>}, {pipeline_mode = #tpu.pipeline_mode<synchronous>, transform_indices = @transform_2, window_bounds = array<i64: 1, 256>}, {pipeline_mode = #tpu.pipeline_mode<synchronous>, transform_indices = @transform_3, window_bounds = array<i64: 256, 256>}, {pipeline_mode = #tpu.pipeline_mode<synchronous>, transform_indices = @transform_4, window_bounds = array<i64: 1, 256>}, {pipeline_mode = #tpu.pipeline_mode<synchronous>, transform_indices = @transform_5, window_bounds = array<i64: 256, 256>}, {pipeline_mode = #tpu.pipeline_mode<synchronous>, transform_indices = @transform_6, window_bounds = array<i64: 1, 256>}, {pipeline_mode = #tpu.pipeline_mode<synchronous>, transform_indices = @transform_7, window_bounds = array<i64: 256, 512>}, {pipeline_mode = #tpu.pipeline_mode<synchronous>, transform_indices = @transform_8, window_bounds = array<i64: 1, 512>}, {transform_indices = @transform_9, window_bounds = array<i64: 16, 512>}]} {
    %c0 = arith.constant 0 : index
    %c0_0 = arith.constant 0 : index
    %0 = vector.load %arg1[%c0, %c0_0] : memref<16x514xf32, #tpu.memory_space<vmem>>, vector<16x514xf32>
    %1 = arith.truncf %0 : vector<16x514xf32> to vector<16x514xbf16>
    %c0_1 = arith.constant 0 : index
    %c0_2 = arith.constant 0 : index
    %2 = vector.load %arg2[%c0_1, %c0_2] : memref<514x256xbf16, #tpu.memory_space<vmem>>, vector<514x256xbf16>
    %cst = arith.constant dense<0.000000e+00> : vector<16x256xf32>
    %3 = tpu.matmul %1, %2, %cst {dimension_numbers = #tpu.dot_dimension_numbers<[1], [0], [0], [1], [0, 0, 1, 1], [], []>} : vector<16x514xbf16>, vector<514x256xbf16>, vector<16x256xf32> -> vector<16x256xf32>
    %c0_3 = arith.constant 0 : index
    %c0_4 = arith.constant 0 : index
    %4 = vector.load %arg3[%c0_3, %c0_4] : memref<1x256xf32, #tpu.memory_space<vmem>>, vector<1x256xf32>
    %5 = vector.broadcast %4 : vector<1x256xf32> to vector<16x256xf32>
    %6 = arith.addf %3, %5 : vector<16x256xf32>
    %cst_5 = arith.constant 0.000000e+00 : f32
    %7 = vector.broadcast %cst_5 : f32 to vector<16x256xf32>
    %8 = arith.cmpf ogt, %6, %7 : vector<16x256xf32>
    %9 = math.exp %6 : vector<16x256xf32>
    %cst_6 = arith.constant 1.000000e+00 : f32
    %10 = vector.broadcast %cst_6 : f32 to vector<16x256xf32>
    %11 = arith.subf %9, %10 : vector<16x256xf32>
    %12 = arith.select %8, %6, %11 : vector<16x256xi1>, vector<16x256xf32>
    %13 = arith.truncf %12 : vector<16x256xf32> to vector<16x256xbf16>
    %c0_7 = arith.constant 0 : index
    %c0_8 = arith.constant 0 : index
    %14 = vector.load %arg4[%c0_7, %c0_8] : memref<256x256xbf16, #tpu.memory_space<vmem>>, vector<256x256xbf16>
    %cst_9 = arith.constant dense<0.000000e+00> : vector<16x256xf32>
    %15 = tpu.matmul %13, %14, %cst_9 {dimension_numbers = #tpu.dot_dimension_numbers<[1], [0], [0], [1], [0, 0, 1, 1], [], []>} : vector<16x256xbf16>, vector<256x256xbf16>, vector<16x256xf32> -> vector<16x256xf32>
    %c0_10 = arith.constant 0 : index
    %c0_11 = arith.constant 0 : index
    %16 = vector.load %arg5[%c0_10, %c0_11] : memref<1x256xf32, #tpu.memory_space<vmem>>, vector<1x256xf32>
    %17 = vector.broadcast %16 : vector<1x256xf32> to vector<16x256xf32>
    %18 = arith.addf %15, %17 : vector<16x256xf32>
    %cst_12 = arith.constant 0.000000e+00 : f32
    %19 = vector.broadcast %cst_12 : f32 to vector<16x256xf32>
    %20 = arith.cmpf ogt, %18, %19 : vector<16x256xf32>
    %21 = math.exp %18 : vector<16x256xf32>
    %cst_13 = arith.constant 1.000000e+00 : f32
    %22 = vector.broadcast %cst_13 : f32 to vector<16x256xf32>
    %23 = arith.subf %21, %22 : vector<16x256xf32>
    %24 = arith.select %20, %18, %23 : vector<16x256xi1>, vector<16x256xf32>
    %cst_14 = arith.constant 0.000000e+00 : f32
    %25 = vector.broadcast %cst_14 : f32 to vector<16x256xf32>
    %26 = arith.cmpf ogt, %24, %25 : vector<16x256xf32>
    %27 = math.exp %24 : vector<16x256xf32>
    %cst_15 = arith.constant 1.000000e+00 : f32
    %28 = vector.broadcast %cst_15 : f32 to vector<16x256xf32>
    %29 = arith.subf %27, %28 : vector<16x256xf32>
    %30 = arith.select %26, %24, %29 : vector<16x256xi1>, vector<16x256xf32>
    %31 = arith.truncf %30 : vector<16x256xf32> to vector<16x256xbf16>
    %c0_16 = arith.constant 0 : index
    %c0_17 = arith.constant 0 : index
    %32 = vector.load %arg6[%c0_16, %c0_17] : memref<256x256xbf16, #tpu.memory_space<vmem>>, vector<256x256xbf16>
    %cst_18 = arith.constant dense<0.000000e+00> : vector<16x256xf32>
    %33 = tpu.matmul %31, %32, %cst_18 {dimension_numbers = #tpu.dot_dimension_numbers<[1], [0], [0], [1], [0, 0, 1, 1], [], []>} : vector<16x256xbf16>, vector<256x256xbf16>, vector<16x256xf32> -> vector<16x256xf32>
    %c0_19 = arith.constant 0 : index
    %c0_20 = arith.constant 0 : index
    %34 = vector.load %arg7[%c0_19, %c0_20] : memref<1x256xf32, #tpu.memory_space<vmem>>, vector<1x256xf32>
    %35 = vector.broadcast %34 : vector<1x256xf32> to vector<16x256xf32>
    %36 = arith.addf %33, %35 : vector<16x256xf32>
    %cst_21 = arith.constant 0.000000e+00 : f32
    %37 = vector.broadcast %cst_21 : f32 to vector<16x256xf32>
    %38 = arith.cmpf ogt, %36, %37 : vector<16x256xf32>
    %39 = math.exp %36 : vector<16x256xf32>
    %cst_22 = arith.constant 1.000000e+00 : f32
    %40 = vector.broadcast %cst_22 : f32 to vector<16x256xf32>
    %41 = arith.subf %39, %40 : vector<16x256xf32>
    %42 = arith.select %38, %36, %41 : vector<16x256xi1>, vector<16x256xf32>
    %43 = arith.truncf %42 : vector<16x256xf32> to vector<16x256xbf16>
    %c0_23 = arith.constant 0 : index
    %c0_24 = arith.constant 0 : index
    %44 = vector.load %arg8[%c0_23, %c0_24] : memref<256x512xbf16, #tpu.memory_space<vmem>>, vector<256x512xbf16>
    %cst_25 = arith.constant dense<0.000000e+00> : vector<16x512xf32>
    %45 = tpu.matmul %43, %44, %cst_25 {dimension_numbers = #tpu.dot_dimension_numbers<[1], [0], [0], [1], [0, 0, 1, 1], [], []>} : vector<16x256xbf16>, vector<256x512xbf16>, vector<16x512xf32> -> vector<16x512xf32>
    %c0_26 = arith.constant 0 : index
    %c0_27 = arith.constant 0 : index
    %46 = vector.load %arg9[%c0_26, %c0_27] : memref<1x512xf32, #tpu.memory_space<vmem>>, vector<1x512xf32>
    %47 = vector.broadcast %46 : vector<1x512xf32> to vector<16x512xf32>
    %48 = arith.addf %45, %47 : vector<16x512xf32>
    %49 = arith.truncf %48 : vector<16x512xf32> to vector<16x512xbf16>
    %c0_28 = arith.constant 0 : index
    %c0_29 = arith.constant 0 : index
    %50 = vector.load %arg10[%c0_28, %c0_29] : memref<16x512xbf16, #tpu.memory_space<vmem>>, vector<16x512xbf16>
    tpu.vector_store %arg10[%c0_28, %c0_29], %49 {strides = array<i32>} : memref<16x512xbf16, #tpu.memory_space<vmem>>, vector<16x512xbf16>,
    return
  }
  func.func @transform_0(%arg0: i32) -> (i32, i32) {
    %c0_i32 = arith.constant 0 : i32
    %c0_i32_0 = arith.constant 0 : i32
    return %arg0, %c0_i32 : i32, i32
  }
  func.func @transform_1(%arg0: i32) -> (i32, i32) {
    %c0_i32 = arith.constant 0 : i32
    %c0_i32_0 = arith.constant 0 : i32
    %c0_i32_1 = arith.constant 0 : i32
    return %c0_i32, %c0_i32_0 : i32, i32
  }
  func.func @transform_2(%arg0: i32) -> (i32, i32) {
    %c0_i32 = arith.constant 0 : i32
    %c0_i32_0 = arith.constant 0 : i32
    %c0_i32_1 = arith.constant 0 : i32
    return %c0_i32, %c0_i32_0 : i32, i32
  }
  func.func @transform_3(%arg0: i32) -> (i32, i32) {
    %c0_i32 = arith.constant 0 : i32
    %c0_i32_0 = arith.constant 0 : i32
    %c0_i32_1 = arith.constant 0 : i32
    return %c0_i32, %c0_i32_0 : i32, i32
  }
  func.func @transform_4(%arg0: i32) -> (i32, i32) {
    %c0_i32 = arith.constant 0 : i32
    %c0_i32_0 = arith.constant 0 : i32
    %c0_i32_1 = arith.constant 0 : i32
    return %c0_i32, %c0_i32_0 : i32, i32
  }
  func.func @transform_5(%arg0: i32) -> (i32, i32) {
    %c0_i32 = arith.constant 0 : i32
    %c0_i32_0 = arith.constant 0 : i32
    %c0_i32_1 = arith.constant 0 : i32
    return %c0_i32, %c0_i32_0 : i32, i32
  }
  func.func @transform_6(%arg0: i32) -> (i32, i32) {
    %c0_i32 = arith.constant 0 : i32
    %c0_i32_0 = arith.constant 0 : i32
    %c0_i32_1 = arith.constant 0 : i32
    return %c0_i32, %c0_i32_0 : i32, i32
  }
  func.func @transform_7(%arg0: i32) -> (i32, i32) {
    %c0_i32 = arith.constant 0 : i32
    %c0_i32_0 = arith.constant 0 : i32
    %c0_i32_1 = arith.constant 0 : i32
    return %c0_i32, %c0_i32_0 : i32, i32
  }
  func.func @transform_8(%arg0: i32) -> (i32, i32) {
    %c0_i32 = arith.constant 0 : i32
    %c0_i32_0 = arith.constant 0 : i32
    %c0_i32_1 = arith.constant 0 : i32
    return %c0_i32, %c0_i32_0 : i32, i32
  }
  func.func @transform_9(%arg0: i32) -> (i32, i32) {
    %c0_i32 = arith.constant 0 : i32
    %c0_i32_0 = arith.constant 0 : i32
    return %arg0, %c0_i32 : i32, i32
  }
}

</mosaic_0001>

<bundles_post_ra>
// kernel: tpu_custom_call.1
= control target key start
LH: loop header
LB: loop body
LE: loop exit
PB: predicated region body
PF: predicated region fallthrough
CT: control target
= control target key end

     0   :  { %14 = vsyncpa [#allocation3], 0  ;;  %s3225_s0 = inlined_call_operand.hbm [shape: f32[9,514], index: 0, kind: input, shape index: {}]   ;;  %s3226_s1 = inlined_call_operand.hbm [shape: bf16[514,256], index: 1, kind: input, shape index: {}]   ;;  %s3227_s2 = inlined_call_operand.hbm [shape: f32[1,256], index: 2, kind: input, shape index: {}]   ;;  %s3228_s3 = inlined_call_operand.hbm [shape: bf16[256,256], index: 3, kind: input, shape index: {}]   ;;  %s3229_s4 = inlined_call_operand.vmem [shape: f32[1,256], index: 4, kind: input, shape index: {}]   ;;  %s3230_s5 = inlined_call_operand.hbm [shape: bf16[256,256], index: 5, kind: input, shape index: {}]   ;;  %s3231_s6 = inlined_call_operand.hbm [shape: f32[1,256], index: 6, kind: input, shape index: {}]   ;;  %s3232_s7 = inlined_call_operand.hbm [shape: bf16[256,512], index: 7, kind: input, shape index: {}]   ;;  %s3233_s8 = inlined_call_operand.vmem [shape: f32[1,512], index: 8, kind: input, shape index: {}]   ;;  %s3234_s9 = inlined_call_operand.hbm [shape: bf16[9,512], index: 9, kind: output, shape index: {}]  }
   0x1   :  { %15 = vsyncpa [#allocation6], 0 }
   0x2   :  { %16 = vsyncpa [#allocation9], 0 }
   0x3   :  { %17 = vsyncpa [#allocation12], 0  ;;  %s36_s11 = sshll.u32 %s3226_s1, 4  ;;  %s37_s11 = int_to_ptr.hbm [resolvable:$true] %s36_s11 }
   0x4   :  { %18 = vsyncpa [#allocation4], 0  ;;  %s3057_s12 = smov [#allocation5]   ;;  %s60_s16 = sshll.u32 %s3228_s3, 4  ;;  %s61_s16 = int_to_ptr.hbm [resolvable:$true] %s60_s16 }
   0x5   :  { %s38_s13 = sshll.u32 %s3057_s12, 4  ;;  %s3058_s17 = smov 128   ;;  %s39_s13 = int_to_ptr.vmem [resolvable:$true] %s38_s13 }
   0x6   :  { %s3059_s18 = smov 8   ;;  %s3060_s19 = smov [#allocation8]  }
   0x7   :  { %44 = dma.hbm_to_vmem [thread:$0]  %s37_s11, 8320, %s39_s13, [#allocation6], %s3058_s17, %s3058_s17, %s3059_s18  }
   0x8   :  { %s62_s20 = sshll.u32 %s3060_s19, 4  ;;  %s89_s22 = sshll.u32 %s3231_s6, 4  ;;  %s63_s20 = int_to_ptr.vmem [resolvable:$true] %s62_s20  ;;  %s90_s22 = int_to_ptr.hbm [resolvable:$true] %s89_s22 }
   0x9   :  { %68 = dma.hbm_to_vmem [thread:$0]  %s61_s16, 4096, %s63_s20, [#allocation9], %s3058_s17, %s3058_s17, %s3059_s18  }
   0xa   :  { %s23_s24 = sshll.u32 %s3225_s0, 4  ;;  %s3061_s25 = smov [#allocation11]   ;;  %s24_s24 = int_to_ptr.hbm [resolvable:$true] %s23_s24 }
   0xb   :  { %s91_s26 = sshll.u32 %s3061_s25, 4  ;;  %s3062_s27 = smov [#allocation2]   ;;  %s92_s26 = int_to_ptr.vmem [resolvable:$true] %s91_s26 }
   0xc   :  { %94 = dma.hbm_to_vmem [thread:$0]  %s90_s22, 32, %s92_s26, [#allocation12]  }
   0xd   :  { %s25_s28 = sshll.u32 %s3062_s27, 4  ;;  %s3063_s29 = smov 640   ;;  %s26_s28 = int_to_ptr.vmem [resolvable:$true] %s25_s28 }
   0xe   :  { %s3064_s6 = smov 40   ;;  %s50_s11 = sshll.u32 %s3227_s2, 4  ;;  %s51_s11 = int_to_ptr.hbm [resolvable:$true] %s50_s11 }
   0xf   :  { %31 = dma.hbm_to_vmem [thread:$0]  %s24_s24, 1280, %s26_s28, [#allocation3], %s3063_s29, %s3063_s29, %s3064_s6  }
  0x10   :  { %s3065_s12 = smov [#allocation7]   ;;  %s75_s15 = sshll.u32 %s3230_s5, 4  ;;  %s76_s15 = int_to_ptr.hbm [resolvable:$true] %s75_s15 }
  0x11   :  { %s52_s13 = sshll.u32 %s3065_s12, 4  ;;  %s3066_s16 = smov [#allocation10]   ;;  %s53_s13 = int_to_ptr.vmem [resolvable:$true] %s52_s13 }
  0x12   :  { %55 = dma.hbm_to_vmem [thread:$0]  %s51_s11, 32, %s53_s13, [#allocation6]  }
  0x13   :  { %s77_s19 = sshll.u32 %s3066_s16, 4  ;;  %s99_s1 = sshll.u32 %s3232_s7, 4  ;;  %s78_s19 = int_to_ptr.vmem [resolvable:$true] %s77_s19  ;;  %s100_s1 = int_to_ptr.hbm [resolvable:$true] %s99_s1 }
  0x14   :  { %83 = dma.hbm_to_vmem [thread:$0]  %s76_s15, 4096, %s78_s19, [#allocation9], %s3058_s17, %s3058_s17, %s3059_s18  }
  0x15   :  { %s3067_s2 = smov [#allocation13]   ;;  %s3068_s3 = smov 256  }
  0x16   :  { %s101_s22 = sshll.u32 %s3067_s2, 4  ;;  %s3069_s23 = smov 16   ;;  %s102_s22 = int_to_ptr.vmem [resolvable:$true] %s101_s22 }
  0x17   :  { %107 = dma.hbm_to_vmem [thread:$0]  %s100_s1, 8192, %s102_s22, [#allocation12], %s3068_s3, %s3068_s3, %s3069_s23  }
  0x18   :  { %3047 = dma.done.wait [#allocation3], 1280  }
  0x19   :  { %3048 = vsyncadd [#allocation3], 4294966016 }
  0x1a   :  { %3049 = dma.done.wait [#allocation6], 8352  }
  0x1b   :  { %3050 = vsyncadd [#allocation6], 4294958944 }
  0x1c   :  { %3051 = dma.done.wait [#allocation9], 8192  }
  0x1d   :  { %3052 = vsyncadd [#allocation9], 4294959104 }
  0x1e   :  { %3053 = dma.done.wait [#allocation12], 8224  }
  0x1f   :  { %3054 = vsyncadd [#allocation12], 4294959072  ;;  %v1889_v0 = vld [vmem:[#allocation5 + $0x70] sm:$0xf]  ;;  %v2632_v1 = vld [vmem:[#allocation5 + $0x74] sm:$0xf0] }
  0x20   :  { %v1953_v2 = vld [vmem:[#allocation5 + $0xf0] sm:$0xf]  ;;  %v1890_v3 = vor.u32 %v2632_v1, %v1889_v0  ;;  %v2648_v4 = vld [vmem:[#allocation5 + $0xf4] sm:$0xf0]  ;;  %v1881_v11 = vld [vmem:[#allocation5 + $0x60] sm:$0xf] }
  0x21   :  { %v2017_v5 = vld [vmem:[#allocation5 + $0x170] sm:$0xf]  ;;  %v2664_v6 = vld [vmem:[#allocation5 + $0x174] sm:$0xf0]  ;;  %v1954_v7 = vor.u32 %v2648_v4, %v1953_v2  ;;  %v2630_v13 = vld [vmem:[#allocation5 + $0x64] sm:$0xf0] }
  0x22   :  { %v2018_v8 = vor.u32 %v2664_v6, %v2017_v5  ;;  %v2081_v9 = vld [vmem:[#allocation5 + $0x1f0] sm:$0xf]  ;;  %v2680_v10 = vld [vmem:[#allocation5 + $0x1f4] sm:$0xf0]  ;;  %561 = vmatpush.bf16.msra.mxu0 %v1890_v3  ;;  %v1945_v14 = vld [vmem:[#allocation5 + $0xe0] sm:$0xf]  ;;  %v1882_v16 = vor.u32 %v2630_v13, %v1881_v11 }
  0x23   :  { %v2082_v12 = vor.u32 %v2680_v10, %v2081_v9  ;;  %v2646_v15 = vld [vmem:[#allocation5 + $0xe4] sm:$0xf0]  ;;  %575 = vmatpush.bf16.msra.mxu1 %v1954_v7  ;;  %v2009_v18 = vld [vmem:[#allocation5 + $0x160] sm:$0xf]  ;;  %v1873_v23 = vld [vmem:[#allocation5 + $0x50] sm:$0xf] }
  0x24   :  { %589 = vmatpush.bf16.msra.mxu2 %v2018_v8  ;;  %v1946_v17 = vor.u32 %v2646_v15, %v1945_v14  ;;  %v2662_v19 = vld [vmem:[#allocation5 + $0x164] sm:$0xf0]  ;;  %v2073_v20 = vld [vmem:[#allocation5 + $0x1e0] sm:$0xf]  ;;  %v2628_v24 = vld [vmem:[#allocation5 + $0x54] sm:$0xf0] }
  0x25   :  { %603 = vmatpush.bf16.msra.mxu3 %v2082_v12  ;;  %v2010_v21 = vor.u32 %v2662_v19, %v2009_v18  ;;  %v2678_v22 = vld [vmem:[#allocation5 + $0x1e4] sm:$0xf0]  ;;  %v1937_v26 = vld [vmem:[#allocation5 + $0xd0] sm:$0xf]  ;;  %v2644_v27 = vld [vmem:[#allocation5 + $0xd4] sm:$0xf0]  ;;  %v1874_v29 = vor.u32 %v2628_v24, %v1873_v23 }
  0x26   :  { %v2074_v25 = vor.u32 %v2678_v22, %v2073_v20  ;;  %v2001_v28 = vld [vmem:[#allocation5 + $0x150] sm:$0xf]  ;;  %562 = vmatpush.bf16.msra.mxu0 %v1882_v16  ;;  %v2660_v30 = vld [vmem:[#allocation5 + $0x154] sm:$0xf0]  ;;  %v1938_v33 = vor.u32 %v2644_v27, %v1937_v26  ;;  %v1865_v35 = vld [vmem:[#allocation5 + $0x40] sm:$0xf] }
  0x27   :  { %v2065_v31 = vld [vmem:[#allocation5 + $0x1d0] sm:$0xf]  ;;  %v2676_v32 = vld [vmem:[#allocation5 + $0x1d4] sm:$0xf0]  ;;  %576 = vmatpush.bf16.msra.mxu1 %v1946_v17  ;;  %v2002_v34 = vor.u32 %v2660_v30, %v2001_v28  ;;  %v2626_v36 = vld [vmem:[#allocation5 + $0x44] sm:$0xf0] }
  0x28   :  { %590 = vmatpush.bf16.msra.mxu2 %v2010_v21  ;;  %v1929_v37 = vld [vmem:[#allocation5 + $0xc0] sm:$0xf]  ;;  %v2066_v38 = vor.u32 %v2676_v32, %v2065_v31  ;;  %v2642_v39 = vld [vmem:[#allocation5 + $0xc4] sm:$0xf0]  ;;  %v1866_v44 = vor.u32 %v2626_v36, %v1865_v35  ;;  %v1857_v47 = vld [vmem:[#allocation5 + $0x30] sm:$0xf] }
  0x29   :  { %604 = vmatpush.bf16.msra.mxu3 %v2074_v25  ;;  %v1993_v40 = vld [vmem:[#allocation5 + $0x140] sm:$0xf]  ;;  %v2658_v41 = vld [vmem:[#allocation5 + $0x144] sm:$0xf0]  ;;  %v1930_v45 = vor.u32 %v2642_v39, %v1929_v37  ;;  %v2624_v48 = vld [vmem:[#allocation5 + $0x34] sm:$0xf0] }
  0x2a   :  { %v2057_v42 = vld [vmem:[#allocation5 + $0x1c0] sm:$0xf]  ;;  %v2674_v43 = vld [vmem:[#allocation5 + $0x1c4] sm:$0xf0]  ;;  %563 = vmatpush.bf16.msra.mxu0 %v1874_v29  ;;  %v1994_v46 = vor.u32 %v2658_v41, %v1993_v40  ;;  %v1921_v49 = vld [vmem:[#allocation5 + $0xb0] sm:$0xf]  ;;  %v1858_v56 = vor.u32 %v2624_v48, %v1857_v47 }
  0x2b   :  { %577 = vmatpush.bf16.msra.mxu1 %v1938_v33  ;;  %v2058_v50 = vor.u32 %v2674_v43, %v2057_v42  ;;  %v2640_v51 = vld [vmem:[#allocation5 + $0xb4] sm:$0xf0]  ;;  %v1985_v52 = vld [vmem:[#allocation5 + $0x130] sm:$0xf]  ;;  %v1849_v59 = vld [vmem:[#allocation5 + $0x20] sm:$0xf] }
  0x2c   :  { %591 = vmatpush.bf16.msra.mxu2 %v2002_v34  ;;  %v2656_v53 = vld [vmem:[#allocation5 + $0x134] sm:$0xf0]  ;;  %v2049_v54 = vld [vmem:[#allocation5 + $0x1b0] sm:$0xf]  ;;  %v1922_v57 = vor.u32 %v2640_v51, %v1921_v49  ;;  %v2622_v60 = vld [vmem:[#allocation5 + $0x24] sm:$0xf0] }
  0x2d   :  { %605 = vmatpush.bf16.msra.mxu3 %v2066_v38  ;;  %v2672_v55 = vld [vmem:[#allocation5 + $0x1b4] sm:$0xf0]  ;;  %v1986_v58 = vor.u32 %v2656_v53, %v1985_v52  ;;  %v1913_v61 = vld [vmem:[#allocation5 + $0xa0] sm:$0xf]  ;;  %v2638_v63 = vld [vmem:[#allocation5 + $0xa4] sm:$0xf0]  ;;  %v1850_v4 = vor.u32 %v2622_v60, %v1849_v59 }
  0x2e   :  { %564 = vmatpush.bf16.msra.mxu0 %v1866_v44  ;;  %v2050_v62 = vor.u32 %v2672_v55, %v2049_v54  ;;  %v1977_v0 = vld [vmem:[#allocation5 + $0x120] sm:$0xf]  ;;  %v2654_v1 = vld [vmem:[#allocation5 + $0x124] sm:$0xf0]  ;;  %v1841_v5 = vld [vmem:[#allocation5 + $0x10] sm:$0xf]  ;;  %v1914_v6 = vor.u32 %v2638_v63, %v1913_v61 }
  0x2f   :  { %578 = vmatpush.bf16.msra.mxu1 %v1930_v45  ;;  %v2041_v2 = vld [vmem:[#allocation5 + $0x1a0] sm:$0xf]  ;;  %v2670_v3 = vld [vmem:[#allocation5 + $0x1a4] sm:$0xf0]  ;;  %v1978_v7 = vor.u32 %v2654_v1, %v1977_v0  ;;  %v2620_v8 = vld [vmem:[#allocation5 + $0x14] sm:$0xf0] }
  0x30   :  { %592 = vmatpush.bf16.msra.mxu2 %v1994_v46  ;;  %v1905_v9 = vld [vmem:[#allocation5 + $0x90] sm:$0xf]  ;;  %v2636_v10 = vld [vmem:[#allocation5 + $0x94] sm:$0xf0]  ;;  %v2042_v11 = vor.u32 %v2670_v3, %v2041_v2  ;;  %v1833_v16 = vld [vmem:[#allocation5] sm:$0xf]  ;;  %v1842_v18 = vor.u32 %v2620_v8, %v1841_v5 }
  0x31   :  { %606 = vmatpush.bf16.msra.mxu3 %v2058_v50  ;;  %v1969_v12 = vld [vmem:[#allocation5 + $0x110] sm:$0xf]  ;;  %v2652_v13 = vld [vmem:[#allocation5 + $0x114] sm:$0xf0]  ;;  %v2618_v17 = vld [vmem:[#allocation5 + $0x4] sm:$0xf0]  ;;  %v1906_v22 = vor.u32 %v2636_v10, %v1905_v9 }
  0x32   :  { %565 = vmatpush.bf16.msra.mxu0 %v1858_v56  ;;  %v2033_v14 = vld [vmem:[#allocation5 + $0x190] sm:$0xf]  ;;  %v2668_v15 = vld [vmem:[#allocation5 + $0x194] sm:$0xf0]  ;;  %v1897_v19 = vld [vmem:[#allocation5 + $0x80] sm:$0xf]  ;;  %v1970_v23 = vor.u32 %v2652_v13, %v1969_v12  ;;  %v1834_v34 = vor.u32 %v2618_v17, %v1833_v16 }
  0x33   :  { %579 = vmatpush.bf16.msra.mxu1 %v1922_v57  ;;  %v2634_v20 = vld [vmem:[#allocation5 + $0x84] sm:$0xf0]  ;;  %v1961_v21 = vld [vmem:[#allocation5 + $0x100] sm:$0xf]  ;;  %v2034_v27 = vor.u32 %v2668_v15, %v2033_v14  ;;  %v2631_v28 = vld [vmem:[#allocation5 + $0x74] sm:$0xf] }
  0x34   :  { %593 = vmatpush.bf16.msra.mxu2 %v1986_v58  ;;  %v2650_v24 = vld [vmem:[#allocation5 + $0x104] sm:$0xf0]  ;;  %v2025_v25 = vld [vmem:[#allocation5 + $0x180] sm:$0xf]  ;;  %v1891_v29 = vld [vmem:[#allocation5 + $0x78] sm:$0xf0]  ;;  %v1898_v38 = vor.u32 %v2634_v20, %v1897_v19 }
  0x35   :  { %607 = vmatpush.bf16.msra.mxu3 %v2050_v62  ;;  %v2666_v26 = vld [vmem:[#allocation5 + $0x184] sm:$0xf0]  ;;  %v2647_v30 = vld [vmem:[#allocation5 + $0xf4] sm:$0xf]  ;;  %v1955_v31 = vld [vmem:[#allocation5 + $0xf8] sm:$0xf0]  ;;  %v1962_v39 = vor.u32 %v2650_v24, %v1961_v21  ;;  %v1894_v45 = vor.u32 %v2631_v28, %v1891_v29 }
  0x36   :  { %566 = vmatpush.bf16.msra.mxu0 %v1850_v4  ;;  %v2663_v32 = vld [vmem:[#allocation5 + $0x174] sm:$0xf]  ;;  %v2019_v33 = vld [vmem:[#allocation5 + $0x178] sm:$0xf0]  ;;  %v3154_v37 = vld [vmem:[#allocation5 + $0x200] sm:$0x11]  ;;  %v2026_v44 = vor.u32 %v2666_v26, %v2025_v25  ;;  %v1958_v49 = vor.u32 %v2647_v30, %v1955_v31 }
  0x37   :  { %580 = vmatpush.bf16.msra.mxu1 %v1914_v6  ;;  %v139_v35 = vld [vmem:[#allocation2] sm:$0xff]  ;;  %v144_v36 = vld [vmem:[#allocation2 + $0x28] sm:$0xff]  ;;  %v141_v40 = vld [vmem:[#allocation2 + $0x10] sm:$0xff]  ;;  %v418_v43 = vunpack.c.l.b16 %v3154_v37  ;;  %vm554_vm0 = vcmask 1040384   ;;  %v2022_v50 = vor.u32 %v2663_v32, %v2019_v33  ;;  %vm550_vm1 = vcmask 15360   ;;  %s1815_s26 = sshll.u32 %s3234_s9, 4  ;;  %s1816_s26 = int_to_ptr.hbm [resolvable:$true] %s1815_s26 }
  0x38   :  { %594 = vmatpush.bf16.msra.mxu2 %v1978_v7  ;;  %v146_v41 = vld [vmem:[#allocation2 + $0x38] sm:$0xff]  ;;  %v2629_v42 = vld [vmem:[#allocation5 + $0x64] sm:$0xf]  ;;  %v147_v48 = vld [vmem:[#allocation2 + $0x40] sm:$0xff]  ;;  %v3157_v55 = vpack.c.bf16 %v144_v36, %v139_v35 }
  0x39   :  { %608 = vmatpush.bf16.msra.mxu3 %v2042_v11  ;;  %v1883_v46 = vld [vmem:[#allocation5 + $0x68] sm:$0xf0]  ;;  %v2645_v51 = vld [vmem:[#allocation5 + $0xe4] sm:$0xf]  ;;  %v484_v52 = vpack.c.b16 %v418_v43, %v418_v43  ;;  %v2679_v53 = vld [vmem:[#allocation5 + $0x1f4] sm:$0xf]  ;;  %v3159_v56 = vpack.c.bf16 %v146_v41, %v141_v40 }
  0x3a   :  { %567 = vmatpush.bf16.msra.mxu0 %v1842_v18  ;;  %v142_v47 = vld [vmem:[#allocation2 + $0x18] sm:$0xff]  ;;  %v2083_v54 = vld [vmem:[#allocation5 + $0x1f8] sm:$0xf0]  ;;  %v2661_v58 = vld [vmem:[#allocation5 + $0x164] sm:$0xf]  ;;  %v1886_v63 = vor.u32 %v2629_v42, %v1883_v46 }
  0x3b   :  { %581 = vmatpush.bf16.msra.mxu1 %v1906_v22  ;;  %v1947_v57 = vld [vmem:[#allocation5 + $0xe8] sm:$0xf0]  ;;  %v3161_v60 = vpack.c.bf16 %v147_v48, %v142_v47  ;;  %v140_v61 = vld [vmem:[#allocation2 + $0x8] sm:$0xff]  ;;  %v145_v62 = vld [vmem:[#allocation2 + $0x30] sm:$0xff]  ;;  %v556_v0 = vsel %vm554_vm0, %v484_v52, 0  ;;  %v2086_v1 = vor.u32 %v2679_v53, %v2083_v54 }
  0x3c   :  { %595 = vmatpush.bf16.msra.mxu2 %v1970_v23  ;;  %v2011_v59 = vld [vmem:[#allocation5 + $0x168] sm:$0xf0]  ;;  %v2627_v2 = vld [vmem:[#allocation5 + $0x54] sm:$0xf]  ;;  %v1875_v3 = vld [vmem:[#allocation5 + $0x58] sm:$0xf0]  ;;  %v1950_v4 = vor.u32 %v2645_v51, %v1947_v57  ;;  %v3166_v9 = vpack.c.bf16 %v145_v62, %v140_v61 }
  0x3d   :  { %609 = vmatpush.bf16.msra.mxu3 %v2034_v27  ;;  %v2014_v5 = vor.u32 %v2661_v58, %v2011_v59  ;;  %v2643_v6 = vld [vmem:[#allocation5 + $0xd4] sm:$0xf]  ;;  %v2677_v7 = vld [vmem:[#allocation5 + $0x1e4] sm:$0xf]  ;;  %v2075_v8 = vld [vmem:[#allocation5 + $0x1e8] sm:$0xf0]  ;;  %v1878_v13 = vor.u32 %v2627_v2, %v1875_v3 }
  0x3e   :  { %568 = vmatpush.bf16.msra.mxu0 %v1834_v34  ;;  %v1939_v10 = vld [vmem:[#allocation5 + $0xd8] sm:$0xf0]  ;;  %v2659_v11 = vld [vmem:[#allocation5 + $0x154] sm:$0xf]  ;;  %v2078_v14 = vor.u32 %v2677_v7, %v2075_v8  ;;  %v2625_v15 = vld [vmem:[#allocation5 + $0x44] sm:$0xf] }
  0x3f   :  { %582 = vmatpush.bf16.msra.mxu1 %v1898_v38  ;;  %v2003_v12 = vld [vmem:[#allocation5 + $0x158] sm:$0xf0]  ;;  %v1867_v16 = vld [vmem:[#allocation5 + $0x48] sm:$0xf0]  ;;  %v1942_v17 = vor.u32 %v2643_v6, %v1939_v10  ;;  %v2641_v19 = vld [vmem:[#allocation5 + $0xc4] sm:$0xf] }
  0x40   :  { %596 = vmatpush.bf16.msra.mxu2 %v1962_v39  ;;  %v2006_v18 = vor.u32 %v2659_v11, %v2003_v12  ;;  %v2675_v20 = vld [vmem:[#allocation5 + $0x1d4] sm:$0xf]  ;;  %v2067_v21 = vld [vmem:[#allocation5 + $0x1d8] sm:$0xf0]  ;;  %v1931_v22 = vld [vmem:[#allocation5 + $0xc8] sm:$0xf0]  ;;  %v1870_v25 = vor.u32 %v2625_v15, %v1867_v16 }
  0x41   :  { %610 = vmatpush.bf16.msra.mxu3 %v2026_v44  ;;  %569 = vmatmul.bf16.vlgmr.msra.gmra.mxu0 %v3157_v55  ;;  %v2657_v23 = vld [vmem:[#allocation5 + $0x144] sm:$0xf]  ;;  %v1995_v24 = vld [vmem:[#allocation5 + $0x148] sm:$0xf0]  ;;  %v2070_v26 = vor.u32 %v2675_v20, %v2067_v21  ;;  %v2623_v27 = vld [vmem:[#allocation5 + $0x34] sm:$0xf]  ;;  %v1934_v29 = vor.u32 %v2641_v19, %v1931_v22 }
  0x42   :  { %624 = vmatpush.bf16.msrb.mxu0 %v556_v0  ;;  %583 = vmatmul.bf16.vlgmr.msra.gmra.mxu1 %v3166_v9  ;;  %v1859_v28 = vld [vmem:[#allocation5 + $0x38] sm:$0xf0]  ;;  %v1998_v30 = vor.u32 %v2657_v23, %v1995_v24  ;;  %v2639_v31 = vld [vmem:[#allocation5 + $0xb4] sm:$0xf]  ;;  %v2673_v32 = vld [vmem:[#allocation5 + $0x1c4] sm:$0xf] }
  0x43   :  { %631 = vmatpush.bf16.msrb.mxu1 %v1894_v45  ;;  %597 = vmatmul.bf16.vlgmr.msra.gmra.mxu2 %v3159_v56  ;;  %v2059_v33 = vld [vmem:[#allocation5 + $0x1c8] sm:$0xf0]  ;;  %v1923_v34 = vld [vmem:[#allocation5 + $0xb8] sm:$0xf0]  ;;  %v2655_v35 = vld [vmem:[#allocation5 + $0x134] sm:$0xf]  ;;  %v1862_v40 = vor.u32 %v2623_v27, %v1859_v28 }
  0x44   :  { %645 = vmatpush.bf16.msrb.mxu2 %v1958_v49  ;;  %611 = vmatmul.bf16.vlgmr.msra.gmra.mxu3 %v3161_v60  ;;  %v1987_v36 = vld [vmem:[#allocation5 + $0x138] sm:$0xf0]  ;;  %v143_v38 = vld [vmem:[#allocation2 + $0x20] sm:$0xff]  ;;  %v2062_v41 = vor.u32 %v2673_v32, %v2059_v33  ;;  %v2621_v42 = vld [vmem:[#allocation5 + $0x24] sm:$0xf]  ;;  %v1926_v44 = vor.u32 %v2639_v31, %v1923_v34 }
  0x45   :  { %659 = vmatpush.bf16.msrb.mxu3 %v2022_v50  ;;  %v148_v39 = vld [vmem:[#allocation2 + $0x48] sm:$0xff]  ;;  %v1851_v43 = vld [vmem:[#allocation5 + $0x28] sm:$0xf0]  ;;  %v1990_v45 = vor.u32 %v2655_v35, %v1987_v36  ;;  %v2637_v46 = vld [vmem:[#allocation5 + $0xa4] sm:$0xf] }
  0x46   :  { %673 = vmatpush.bf16.msra.mxu0 %v2086_v1  ;;  %v2671_v47 = vld [vmem:[#allocation5 + $0x1b4] sm:$0xf]  ;;  %v2051_v48 = vld [vmem:[#allocation5 + $0x1b8] sm:$0xf0]  ;;  %v153_v49 = vpack.c.bf16 %v148_v39, %v143_v38  ;;  %v1915_v50 = vld [vmem:[#allocation5 + $0xa8] sm:$0xf0]  ;;  %v1854_v53 = vor.u32 %v2621_v42, %v1851_v43 }
  0x47   :  { %632 = vmatpush.bf16.msrb.mxu1 %v1886_v63  ;;  %v2653_v51 = vld [vmem:[#allocation5 + $0x124] sm:$0xf]  ;;  %v1979_v52 = vld [vmem:[#allocation5 + $0x128] sm:$0xf0]  ;;  %v2054_v54 = vor.u32 %v2671_v47, %v2051_v48  ;;  %v2619_v57 = vld [vmem:[#allocation5 + $0x14] sm:$0xf]  ;;  %v1918_v59 = vor.u32 %v2637_v46, %v1915_v50 }
  0x48   :  { %646 = vmatpush.bf16.msrb.mxu2 %v1950_v4  ;;  %v1843_v58 = vld [vmem:[#allocation5 + $0x18] sm:$0xf0]  ;;  %v1982_v61 = vor.u32 %v2653_v51, %v1979_v52  ;;  %v2635_v62 = vld [vmem:[#allocation5 + $0x94] sm:$0xf]  ;;  %v2669_v63 = vld [vmem:[#allocation5 + $0x1a4] sm:$0xf]  ;;  %v419_v4 = vunpack.c.h.b16 %v3154_v37 }
  0x49   :  { %660 = vmatpush.bf16.msrb.mxu3 %v2014_v5  ;;  %v2043_v0 = vld [vmem:[#allocation5 + $0x1a8] sm:$0xf0]  ;;  %v1907_v1 = vld [vmem:[#allocation5 + $0x98] sm:$0xf0]  ;;  %v2651_v2 = vld [vmem:[#allocation5 + $0x114] sm:$0xf]  ;;  %v1846_v5 = vor.u32 %v2619_v57, %v1843_v58 }
  0x4a   :  { %674 = vmatpush.bf16.msra.mxu0 %v2078_v14  ;;  %v1971_v3 = vld [vmem:[#allocation5 + $0x118] sm:$0xf0]  ;;  %v2046_v6 = vor.u32 %v2669_v63, %v2043_v0  ;;  %v2617_v7 = vld [vmem:[#allocation5 + $0x4] sm:$0xf]  ;;  %v1835_v8 = vld [vmem:[#allocation5 + $0x8] sm:$0xf0]  ;;  %v1910_v10 = vor.u32 %v2635_v62, %v1907_v1 }
  0x4b   :  { %633 = vmatpush.bf16.msrb.mxu1 %v1878_v13  ;;  %v1974_v11 = vor.u32 %v2651_v2, %v1971_v3  ;;  %v2633_v12 = vld [vmem:[#allocation5 + $0x84] sm:$0xf]  ;;  %v2667_v13 = vld [vmem:[#allocation5 + $0x194] sm:$0xf]  ;;  %v2035_v14 = vld [vmem:[#allocation5 + $0x198] sm:$0xf0]  ;;  %v1838_v37 = vor.u32 %v2617_v7, %v1835_v8 }
  0x4c   :  { %647 = vmatpush.bf16.msrb.mxu2 %v1942_v17  ;;  %v1899_v15 = vld [vmem:[#allocation5 + $0x88] sm:$0xf0]  ;;  %v2649_v16 = vld [vmem:[#allocation5 + $0x104] sm:$0xf]  ;;  %v2038_v19 = vor.u32 %v2667_v13, %v2035_v14  ;;  %v2695_v28 = vld [vmem:[#allocation8 + $0x74] sm:$0xf] }
  0x4d   :  { %661 = vmatpush.bf16.msrb.mxu3 %v2006_v18  ;;  %v1963_v17 = vld [vmem:[#allocation5 + $0x108] sm:$0xf0]  ;;  %v485_v18 = vpack.c.b16 %v419_v4, %v419_v4  ;;  %v1902_v20 = vor.u32 %v2633_v12, %v1899_v15  ;;  %v2665_v22 = vld [vmem:[#allocation5 + $0x184] sm:$0xf]  ;;  %v2694_v33 = vld [vmem:[#allocation8 + $0x64] sm:$0xf0] }
  0x4e   :  { %675 = vmatpush.bf16.msra.mxu0 %v2070_v26  ;;  %v1966_v21 = vor.u32 %v2649_v16, %v1963_v17  ;;  %v2027_v23 = vld [vmem:[#allocation5 + $0x188] sm:$0xf0]  ;;  %v2151_v26 = vld [vmem:[#allocation8 + $0x70] sm:$0xf]  ;;  %v2696_v27 = vld [vmem:[#allocation8 + $0x74] sm:$0xf0] }
  0x4f   :  { %634 = vmatpush.bf16.msrb.mxu1 %v1870_v25  ;;  %v559_v24 = vsel %vm554_vm0, %v485_v18, 0  ;;  %v2030_v25 = vor.u32 %v2665_v22, %v2027_v23  ;;  %v2143_v32 = vld [vmem:[#allocation8 + $0x60] sm:$0xf]  ;;  %v2691_v36 = vld [vmem:[#allocation8 + $0x54] sm:$0xf] }
  0x50   :  { %648 = vmatpush.bf16.msrb.mxu2 %v1934_v29  ;;  %v2152_v29 = vor.u32 %v2696_v27, %v2151_v26  ;;  %v2144_v34 = vor.u32 %v2694_v33, %v2143_v32  ;;  %v2137_v39 = vld [vmem:[#allocation8 + $0x58] sm:$0xf0]  ;;  %v2690_v42 = vld [vmem:[#allocation8 + $0x44] sm:$0xf0]  ;;  %v2689_v43 = vld [vmem:[#allocation8 + $0x44] sm:$0xf] }
  0x51   :  { %662 = vmatpush.bf16.msrb.mxu3 %v1998_v30  ;;  %2087 = vmatmul.msk.bf16.vlgmr.msrb.gmra.mxu0 %vm550_vm1, %v153_v49  ;;  %v2153_v30 = vld [vmem:[#allocation8 + $0x78] sm:$0xf0]  ;;  %v2119_v47 = vld [vmem:[#allocation8 + $0x30] sm:$0xf]  ;;  %v2688_v48 = vld [vmem:[#allocation8 + $0x34] sm:$0xf0] }
  0x52   :  { %676 = vmatpush.bf16.msra.mxu0 %v2062_v41  ;;  %v2156_v31 = vor.u32 %v2695_v28, %v2153_v30  ;;  %v2127_v41 = vld [vmem:[#allocation8 + $0x40] sm:$0xf]  ;;  %v2120_v50 = vor.u32 %v2688_v48, %v2119_v47  ;;  %v2121_v51 = vld [vmem:[#allocation8 + $0x38] sm:$0xf0]  ;;  %v2686_v57 = vld [vmem:[#allocation8 + $0x24] sm:$0xf0] }
  0x53   :  { %635 = vmatpush.bf16.msrb.mxu1 %v1862_v40  ;;  %v2140_v40 = vor.u32 %v2691_v36, %v2137_v39  ;;  %v3178_v52 = vld [vmem:[#allocation7] sm:$0x3]  ;;  %v2685_v58 = vld [vmem:[#allocation8 + $0x24] sm:$0xf]  ;;  %v2113_v62 = vld [vmem:[#allocation8 + $0x28] sm:$0xf0] }
  0x54   :  { %649 = vmatpush.bf16.msrb.mxu2 %v1926_v44  ;;  %v2128_v44 = vor.u32 %v2690_v42, %v2127_v41  ;;  %v2116_v63 = vor.u32 %v2685_v58, %v2113_v62  ;;  %v2103_v1 = vld [vmem:[#allocation8 + $0x10] sm:$0xf]  ;;  %v2684_v2 = vld [vmem:[#allocation8 + $0x14] sm:$0xf0]  ;;  %v2683_v3 = vld [vmem:[#allocation8 + $0x14] sm:$0xf] }
  0x55   :  { %663 = vmatpush.bf16.msrb.mxu3 %v1990_v45  ;;  %v2129_v45 = vld [vmem:[#allocation8 + $0x48] sm:$0xf0]  ;;  %v2681_v12 = vld [vmem:[#allocation8 + $0x4] sm:$0xf]  ;;  %v2215_v16 = vld [vmem:[#allocation8 + $0xf0] sm:$0xf] }
  0x56   :  { %677 = vmatpush.bf16.msra.mxu0 %v2054_v54  ;;  %v2132_v46 = vor.u32 %v2689_v43, %v2129_v45  ;;  %v2111_v54 = vld [vmem:[#allocation8 + $0x20] sm:$0xf]  ;;  %v2097_v15 = vld [vmem:[#allocation8 + $0x8] sm:$0xf0]  ;;  %v2712_v17 = vld [vmem:[#allocation8 + $0xf4] sm:$0xf0] }
  0x57   :  { %636 = vmatpush.bf16.msrb.mxu1 %v1854_v53  ;;  %v2710_v26 = vld [vmem:[#allocation8 + $0xe4] sm:$0xf0]  ;;  %v2709_v27 = vld [vmem:[#allocation8 + $0xe4] sm:$0xf]  ;;  %v2209_v30 = vld [vmem:[#allocation8 + $0xe8] sm:$0xf0] }
  0x58   :  { %650 = vmatpush.bf16.msrb.mxu2 %v1918_v59  ;;  %v221_v59 = vperm.slane %v3178_v52, 0  ;;  %v2212_v32 = vor.u32 %v2709_v27, %v2209_v30  ;;  %v2191_v42 = vld [vmem:[#allocation8 + $0xc0] sm:$0xf]  ;;  %v2706_v43 = vld [vmem:[#allocation8 + $0xc4] sm:$0xf0] }
  0x59   :  { %664 = vmatpush.bf16.msrb.mxu3 %v1982_v61  ;;  %v2112_v61 = vor.u32 %v2686_v57, %v2111_v54  ;;  %v2192_v45 = vor.u32 %v2706_v43, %v2191_v42  ;;  %v2703_v54 = vld [vmem:[#allocation8 + $0xb4] sm:$0xf]  ;;  %v2185_v58 = vld [vmem:[#allocation8 + $0xb8] sm:$0xf0] }
  0x5a   :  { %678 = vmatpush.bf16.msra.mxu0 %v2046_v6  ;;  %v2105_v6 = vld [vmem:[#allocation8 + $0x18] sm:$0xf0] }
  0x5b   :  { %637 = vmatpush.bf16.msrb.mxu1 %v1846_v5  ;;  %v2104_v5 = vor.u32 %v2684_v2, %v2103_v1  ;;  %v2108_v7 = vor.u32 %v2683_v3, %v2105_v6  ;;  %v2702_v1 = vld [vmem:[#allocation8 + $0xa4] sm:$0xf0]  ;;  %v2701_v2 = vld [vmem:[#allocation8 + $0xa4] sm:$0xf] }
  0x5c   :  { %651 = vmatpush.bf16.msrb.mxu2 %v1910_v10  ;;  %v2095_v10 = vld [vmem:[#allocation8] sm:$0xf] }
  0x5d   :  { %665 = vmatpush.bf16.msrb.mxu3 %v1974_v11  ;;  %v2682_v11 = vld [vmem:[#allocation8 + $0x4] sm:$0xf0] }
  0x5e   :  { %679 = vmatpush.bf16.msra.mxu0 %v2038_v19  ;;  %v2096_v14 = vor.u32 %v2682_v11, %v2095_v10  ;;  %v2216_v19 = vor.u32 %v2712_v17, %v2215_v16  ;;  %v2700_v10 = vld [vmem:[#allocation8 + $0x94] sm:$0xf0]  ;;  %v2699_v11 = vld [vmem:[#allocation8 + $0x94] sm:$0xf]  ;;  %v2159_v17 = vld [vmem:[#allocation8 + $0x80] sm:$0xf] }
  0x5f   :  { %638 = vmatpush.bf16.msrb.mxu1 %v1838_v37  ;;  %v2100_v37 = vor.u32 %v2681_v12, %v2097_v15  ;;  %v222_v15 = vperm.slane %v3178_v52, 1 }
  0x60   :  { %652 = vmatpush.bf16.msrb.mxu2 %v1902_v20  ;;  %v2711_v20 = vld [vmem:[#allocation8 + $0xf4] sm:$0xf] }
  0x61   :  { %666 = vmatpush.bf16.msrb.mxu3 %v1966_v21  ;;  %v2217_v21 = vld [vmem:[#allocation8 + $0xf8] sm:$0xf0] }
  0x62   :  { %639 = vmatmul.bf16.vlgmr.msrb.gmra.mxu1 %v3157_v55  ;;  %680 = vmatpush.bf16.msra.mxu0 %v2030_v25  ;;  %v2693_v55 = vld [vmem:[#allocation8 + $0x64] sm:$0xf]  ;;  %v2220_v22 = vor.u32 %v2711_v20, %v2217_v21  ;;  %v2207_v25 = vld [vmem:[#allocation8 + $0xe0] sm:$0xf]  ;;  %v2161_v21 = vld [vmem:[#allocation8 + $0x88] sm:$0xf0] }
  0x63   :  { %694 = vmatpush.bf16.msra.mxu1 %v559_v24  ;;  %653 = vmatmul.bf16.vlgmr.msrb.gmra.mxu2 %v3166_v9  ;;  %v2145_v9 = vld [vmem:[#allocation8 + $0x68] sm:$0xf0] }
  0x64   :  { %667 = vmatmul.bf16.vlgmr.msrb.gmra.mxu3 %v3159_v56  ;;  %921 = vmatpush.bf16.msra.mxu2 %v2152_v29  ;;  %v2148_v35 = vor.u32 %v2693_v55, %v2145_v9  ;;  %v2135_v56 = vld [vmem:[#allocation8 + $0x50] sm:$0xf]  ;;  %v2208_v29 = vor.u32 %v2710_v26, %v2207_v25  ;;  %v2708_v9 = vld [vmem:[#allocation8 + $0xd4] sm:$0xf0] }
  0x65   :  { %681 = vmatmul.bf16.vlgmr.msra.gmra.mxu0 %v3161_v60  ;;  %v2692_v60 = vld [vmem:[#allocation8 + $0x54] sm:$0xf0]  ;;  %935 = vmatpush.bf16.msra.mxu3 %v2216_v19 }
  0x66   :  { %949 = vmatpush.bf16.msrb.mxu0 %v2156_v31  ;;  %v2136_v38 = vor.u32 %v2692_v60, %v2135_v56  ;;  %v2201_v60 = vld [vmem:[#allocation8 + $0xd8] sm:$0xf0] }
  0x67   :  { %963 = vmatpush.bf16.msrb.mxu1 %v2220_v22 }
  0x68   :  { %922 = vmatpush.bf16.msra.mxu2 %v2144_v34  ;;  %v2199_v34 = vld [vmem:[#allocation8 + $0xd0] sm:$0xf] }
  0x69   :  { %936 = vmatpush.bf16.msra.mxu3 %v2208_v29  ;;  %v2200_v56 = vor.u32 %v2708_v9, %v2199_v34 }
  0x6a   :  { %950 = vmatpush.bf16.msrb.mxu0 %v2148_v35  ;;  %v2707_v35 = vld [vmem:[#allocation8 + $0xd4] sm:$0xf] }
  0x6b   :  { %964 = vmatpush.bf16.msrb.mxu1 %v2212_v32 }
  0x6c   :  { %923 = vmatpush.bf16.msra.mxu2 %v2136_v38  ;;  %v2204_v38 = vor.u32 %v2707_v35, %v2201_v60 }
  0x6d   :  { %937 = vmatpush.bf16.msra.mxu3 %v2200_v56 }
  0x6e   :  { %951 = vmatpush.bf16.msrb.mxu0 %v2140_v40 }
  0x6f   :  { %965 = vmatpush.bf16.msrb.mxu1 %v2204_v38 }
  0x70   :  { %924 = vmatpush.bf16.msra.mxu2 %v2128_v44  ;;  %v2705_v44 = vld [vmem:[#allocation8 + $0xc4] sm:$0xf] }
  0x71   :  { %938 = vmatpush.bf16.msra.mxu3 %v2192_v45 }
  0x72   :  { %2088 = vmatmul.msk.bf16.vlgmr.msra.gmra.mxu1 %vm550_vm1, %v153_v49  ;;  %952 = vmatpush.bf16.msrb.mxu0 %v2132_v46  ;;  %v2687_v49 = vld [vmem:[#allocation8 + $0x34] sm:$0xf]  ;;  %v2193_v46 = vld [vmem:[#allocation8 + $0xc8] sm:$0xf0] }
  0x73   :  { %v2124_v53 = vor.u32 %v2687_v49, %v2121_v51  ;;  %v2196_v48 = vor.u32 %v2705_v44, %v2193_v46  ;;  %v2183_v51 = vld [vmem:[#allocation8 + $0xb0] sm:$0xf] }
  0x74   :  { %925 = vmatpush.bf16.msra.mxu2 %v2120_v50 }
  0x75   :  { %966 = vmatpush.bf16.msrb.mxu1 %v2196_v48 }
  0x76   :  { %953 = vmatpush.bf16.msrb.mxu0 %v2124_v53  ;;  %v2704_v53 = vld [vmem:[#allocation8 + $0xb4] sm:$0xf0] }
  0x77   :  { %v2184_v57 = vor.u32 %v2704_v53, %v2183_v51  ;;  %v2351_v53 = vld [vmem:[#allocation10 + $0xf0] sm:$0xf] }
  0x78   :  { %926 = vmatpush.bf16.msra.mxu2 %v2112_v61  ;;  %v2188_v61 = vor.u32 %v2703_v54, %v2185_v58  ;;  %v2744_v54 = vld [vmem:[#allocation10 + $0xf4] sm:$0xf0] }
  0x79   :  { %939 = vmatpush.bf16.msra.mxu3 %v2184_v57  ;;  %v2743_v57 = vld [vmem:[#allocation10 + $0xf4] sm:$0xf]  ;;  %v2352_v58 = vor.u32 %v2744_v54, %v2351_v53 }
  0x7a   :  { %954 = vmatpush.bf16.msrb.mxu0 %v2116_v63  ;;  %967 = vmatpush.bf16.msrb.mxu1 %v2188_v61  ;;  %v2719_v53 = vld [vmem:[#allocation10 + $0x34] sm:$0xf] }
  0x7c   :  { %927 = vmatpush.bf16.msra.mxu2 %v2104_v5 }
  0x7e   :  { %955 = vmatpush.bf16.msrb.mxu0 %v2108_v7 }
  0x80   :  { %928 = vmatpush.bf16.msra.mxu2 %v2096_v14 }
  0x82   :  { %956 = vmatpush.bf16.msrb.mxu0 %v2100_v37  ;;  %v2697_v37 = vld [vmem:[#allocation8 + $0x84] sm:$0xf] }
  0xbe   :  { %v570_v0 = vpop.f32.mrf.mxu0 }
  0xbf   :  { %v571_v4 = vadd.f32 %v570_v0, %v221_v59  ;;  %v584_v8 = vpop.f32.mrf.mxu1  ;;  %v2175_v0 = vld [vmem:[#allocation8 + $0xa0] sm:$0xf] }
  0xc0   :  { %v2176_v3 = vor.u32 %v2702_v1, %v2175_v0  ;;  %v2741_v0 = vld [vmem:[#allocation10 + $0xe4] sm:$0xf] }
  0xc1   :  { %v585_v13 = vadd.f32 %v584_v8, %v571_v4  ;;  %v2177_v4 = vld [vmem:[#allocation8 + $0xa8] sm:$0xf0]  ;;  %v2167_v8 = vld [vmem:[#allocation8 + $0x90] sm:$0xf] }
  0xc2   :  { %v2180_v6 = vor.u32 %v2701_v2, %v2177_v4  ;;  %940 = vmatpush.bf16.msra.mxu3 %v2176_v3  ;;  %v2168_v12 = vor.u32 %v2700_v10, %v2167_v8  ;;  %v2345_v2 = vld [vmem:[#allocation10 + $0xe8] sm:$0xf0]  ;;  %v2287_v4 = vld [vmem:[#allocation10 + $0x70] sm:$0xf]  ;;  %v2289_v8 = vld [vmem:[#allocation10 + $0x78] sm:$0xf0] }
  0xc3   :  { %v2348_v3 = vor.u32 %v2741_v0, %v2345_v2 }
  0xc4   :  { %968 = vmatpush.bf16.msrb.mxu1 %v2180_v6  ;;  %v2727_v6 = vld [vmem:[#allocation10 + $0x74] sm:$0xf] }
  0xc5   :  { %v2292_v10 = vor.u32 %v2727_v6, %v2289_v8  ;;  %v2249_v8 = vld [vmem:[#allocation10 + $0x28] sm:$0xf0] }
  0xc6   :  { %v598_v18 = vpop.f32.mrf.mxu2  ;;  %v572_v23 = vpop.f32.mrf.mxu0  ;;  %941 = vmatpush.bf16.msra.mxu3 %v2168_v12  ;;  %v2740_v12 = vld [vmem:[#allocation10 + $0xd4] sm:$0xf0] }
  0xc7   :  { %v599_v24 = vadd.f32 %v598_v18, %v585_v13  ;;  %v612_v28 = vpop.f32.mrf.mxu3  ;;  %v573_v31 = vadd.f32 %v572_v23, %v221_v59  ;;  %v586_v33 = vpop.f32.mrf.mxu1  ;;  %v2169_v13 = vld [vmem:[#allocation8 + $0x98] sm:$0xf0]  ;;  %v2698_v18 = vld [vmem:[#allocation8 + $0x84] sm:$0xf0]  ;;  %1245 = vmatpush.bf16.msra.mxu0 %v2292_v10 }
  0xc8   :  { %v2172_v16 = vor.u32 %v2699_v11, %v2169_v13  ;;  %v2160_v20 = vor.u32 %v2698_v18, %v2159_v17  ;;  %v2335_v11 = vld [vmem:[#allocation10 + $0xd0] sm:$0xf]  ;;  %v2739_v13 = vld [vmem:[#allocation10 + $0xd4] sm:$0xf]  ;;  %v2279_v17 = vld [vmem:[#allocation10 + $0x60] sm:$0xf] }
  0xc9   :  { %v613_v55 = vadd.f32 %v612_v28, %v599_v24  ;;  %v587_v36 = vadd.f32 %v586_v33, %v573_v31  ;;  %v2164_v24 = vor.u32 %v2697_v37, %v2161_v21  ;;  %v2726_v18 = vld [vmem:[#allocation10 + $0x64] sm:$0xf0]  ;;  %v2725_v37 = vld [vmem:[#allocation10 + $0x64] sm:$0xf] }
  0xca   :  { %969 = vmatpush.bf16.msrb.mxu1 %v2172_v16  ;;  %942 = vmatpush.bf16.msra.mxu3 %v2160_v20  ;;  %v2281_v20 = vld [vmem:[#allocation10 + $0x68] sm:$0xf0] }
  0xcb   :  { %v2284_v21 = vor.u32 %v2725_v37, %v2281_v20  ;;  %v2297_v37 = vld [vmem:[#allocation10 + $0x88] sm:$0xf0]  ;;  %v2239_v20 = vld [vmem:[#allocation10 + $0x10] sm:$0xf] }
  0xcd   :  { %1246 = vmatpush.bf16.msra.mxu0 %v2284_v21  ;;  %v2716_v21 = vld [vmem:[#allocation10 + $0x14] sm:$0xf0] }
  0xce   :  { %v600_v39 = vpop.f32.mrf.mxu2  ;;  %v626_v40 = vpop.f32.mrf.mxu0  ;;  %970 = vmatpush.bf16.msrb.mxu1 %v2164_v24  ;;  %1231 = vmatpush.bf16.msrb.mxu3 %v2352_v58  ;;  %v2737_v24 = vld [vmem:[#allocation10 + $0xc4] sm:$0xf]  ;;  %v2257_v58 = vld [vmem:[#allocation10 + $0x38] sm:$0xf0] }
  0xcf   :  { %v3181_v41 = vadd.f32 %v626_v40, %v613_v55  ;;  %v601_v47 = vadd.f32 %v600_v39, %v587_v36  ;;  %v614_v50 = vpop.f32.mrf.mxu3 }
  0xd1   :  { %v705_v49 = vmul.f32 1.442695, %v3181_v41  ;;  %v615_v59 = vadd.f32 %v614_v50, %v601_v47  ;;  %vm701_vm2 = vcmp.gt.f32.partialorder %v3181_v41, 0.0 }
  0xd3   :  { %2823 = vpow2.f32 %v705_v49 }
  0xd6   :  { %v628_v62 = vpop.f32.mrf.mxu0 }
  0xd7   :  { %v629_v63 = vadd.f32 %v628_v62, %v615_v59  ;;  %v2353_v59 = vld [vmem:[#allocation10 + $0xf8] sm:$0xf0]  ;;  %v2343_v62 = vld [vmem:[#allocation10 + $0xe0] sm:$0xf] }
  0xd8   :  { %v2356_v61 = vor.u32 %v2743_v57, %v2353_v59  ;;  %v2260_v59 = vor.u32 %v2719_v53, %v2257_v58  ;;  %v2801_v53 = vld [vmem:[#allocation13 + $0x1c4] sm:$0xf] }
  0xd9   :  { %v709_v5 = vmul.f32 1.442695, %v629_v63  ;;  %v2824_v14 = vpop.eup %2823  ;;  %vm703_vm3 = vcmp.gt.f32.partialorder %v629_v63, 0.0 }
  0xda   :  { %v2089_v19 = vadd.f32 -1.0, %v2824_v14  ;;  %1259 = vmatpush.bf16.msra.mxu1 %v2356_v61  ;;  %v2336_v14 = vor.u32 %v2740_v12, %v2335_v11  ;;  %v2303_v61 = vld [vmem:[#allocation10 + $0x90] sm:$0xf] }
  0xdb   :  { %2825 = vpow2.f32 %v709_v5  ;;  %v2728_v5 = vld [vmem:[#allocation10 + $0x74] sm:$0xf0] }
  0xdc   :  { %v717_v29 = vsel %vm701_vm2, %v3181_v41, %v2089_v19  ;;  %v2280_v19 = vor.u32 %v2726_v18, %v2279_v17 }
  0xde   :  { %1260 = vmatpush.bf16.msra.mxu1 %v2348_v3  ;;  %v2247_v3 = vld [vmem:[#allocation10 + $0x20] sm:$0xf] }
  0xdf   :  { %v640_v7 = vpop.f32.mrf.mxu1 }
  0xe0   :  { %v641_v23 = vadd.f32 %v640_v7, %v222_v15  ;;  %v2288_v7 = vor.u32 %v2728_v5, %v2287_v4  ;;  %v2718_v4 = vld [vmem:[#allocation10 + $0x24] sm:$0xf0]  ;;  %v2717_v5 = vld [vmem:[#allocation10 + $0x24] sm:$0xf] }
  0xe1   :  { %v2826_v22 = vpop.eup %2825  ;;  %v2252_v12 = vor.u32 %v2717_v5, %v2249_v8 }
  0xe2   :  { %v2091_v25 = vadd.f32 -1.0, %v2826_v22  ;;  %v682_v33 = vpop.f32.mrf.mxu0  ;;  %1217 = vmatpush.bf16.msrb.mxu2 %v2288_v7  ;;  %v2327_v22 = vld [vmem:[#allocation10 + $0xc0] sm:$0xf]  ;;  %v2248_v7 = vor.u32 %v2718_v4, %v2247_v3 }
  0xe4   :  { %v719_v30 = vsel %vm703_vm3, %v629_v63, %v2091_v25  ;;  %v2742_v63 = vld [vmem:[#allocation10 + $0xe4] sm:$0xf0] }
  0xe5   :  { %v721_v31 = vpack.c.bf16 %v719_v30, %v717_v29  ;;  %v2344_v1 = vor.u32 %v2742_v63, %v2343_v62  ;;  %v2723_v29 = vld [vmem:[#allocation10 + $0x54] sm:$0xf]  ;;  %v2732_v62 = vld [vmem:[#allocation10 + $0x94] sm:$0xf0] }
  0xe6   :  { %v654_v26 = vpop.f32.mrf.mxu2  ;;  %1218 = vmatpush.bf16.msrb.mxu2 %v2280_v19  ;;  %v2731_v63 = vld [vmem:[#allocation10 + $0x94] sm:$0xf]  ;;  %v2304_v0 = vor.u32 %v2732_v62, %v2303_v61 }
  0xe7   :  { %v655_v27 = vadd.f32 %v654_v26, %v641_v23  ;;  %v668_v52 = vpop.f32.mrf.mxu3  ;;  %v642_v28 = vpop.f32.mrf.mxu1  ;;  %929 = vmatmul.bf16.vlgmr.msra.gmra.mxu2 %v721_v31  ;;  %957 = vmatmul.bf16.vlgmr.msrb.gmra.mxu0 %v721_v31  ;;  %v2738_v23 = vld [vmem:[#allocation10 + $0xc4] sm:$0xf0]  ;;  %v2329_v26 = vld [vmem:[#allocation10 + $0xc8] sm:$0xf0]  ;;  %v2273_v31 = vld [vmem:[#allocation10 + $0x58] sm:$0xf0] }
  0xe8   :  { %v643_v55 = vadd.f32 %v642_v28, %v222_v15  ;;  %1232 = vmatpush.bf16.msrb.mxu3 %v2344_v1  ;;  %v2337_v15 = vld [vmem:[#allocation10 + $0xd8] sm:$0xf0]  ;;  %v2328_v25 = vor.u32 %v2738_v23, %v2327_v22  ;;  %v2724_v28 = vld [vmem:[#allocation10 + $0x54] sm:$0xf0]  ;;  %v2715_v22 = vld [vmem:[#allocation10 + $0x14] sm:$0xf] }
  0xe9   :  { %v669_v32 = vadd.f32 %v668_v52, %v655_v27  ;;  %v2340_v16 = vor.u32 %v2739_v13, %v2337_v15  ;;  %v2332_v27 = vor.u32 %v2737_v24, %v2329_v26  ;;  %v2271_v52 = vld [vmem:[#allocation10 + $0x50] sm:$0xf]  ;;  %v2305_v1 = vld [vmem:[#allocation10 + $0x98] sm:$0xf0]  ;;  %v2295_v13 = vld [vmem:[#allocation10 + $0x80] sm:$0xf]  ;;  %v2240_v24 = vor.u32 %v2716_v21, %v2239_v20 }
  0xea   :  { %v684_v40 = vpop.f32.mrf.mxu0  ;;  %v2272_v30 = vor.u32 %v2724_v28, %v2271_v52  ;;  %v2308_v2 = vor.u32 %v2731_v63, %v2305_v1  ;;  %v2729_v15 = vld [vmem:[#allocation10 + $0x84] sm:$0xf]  ;;  %v2775_v61 = vld [vmem:[#allocation13 + $0xec] sm:$0xf0]  ;;  %v2477_v1 = vld [vmem:[#allocation13 + $0xf0] sm:$0xf0] }
  0xeb   :  { %v683_v34 = vadd.f32 %v682_v33, %v669_v32  ;;  %1261 = vmatpush.bf16.msra.mxu1 %v2340_v16  ;;  %v2276_v32 = vor.u32 %v2723_v29, %v2273_v31  ;;  %v2319_v33 = vld [vmem:[#allocation10 + $0xb0] sm:$0xf]  ;;  %v2300_v19 = vor.u32 %v2729_v15, %v2297_v37  ;;  %v2231_v29 = vld [vmem:[#allocation10] sm:$0xf]  ;;  %v2713_v31 = vld [vmem:[#allocation10 + $0x4] sm:$0xf] }
  0xec   :  { %1233 = vmatpush.bf16.msrb.mxu3 %v2336_v14  ;;  %1219 = vmatpush.bf16.msrb.mxu2 %v2272_v30  ;;  %v2730_v14 = vld [vmem:[#allocation10 + $0x84] sm:$0xf0]  ;;  %v2771_v15 = vld [vmem:[#allocation13 + $0xcc] sm:$0xf0]  ;;  %v2461_v20 = vld [vmem:[#allocation13 + $0xd0] sm:$0xf0] }
  0xed   :  { %1247 = vmatpush.bf16.msra.mxu0 %v2276_v32  ;;  %v2296_v18 = vor.u32 %v2730_v14, %v2295_v13  ;;  %v2714_v30 = vld [vmem:[#allocation10 + $0x4] sm:$0xf0]  ;;  %v2459_v14 = vld [vmem:[#allocation13 + $0xc0] sm:$0xf] }
  0xee   :  { %v656_v9 = vpop.f32.mrf.mxu2 }
  0xef   :  { %v657_v35 = vadd.f32 %v656_v9, %v643_v55  ;;  %v696_v56 = vpop.f32.mrf.mxu1  ;;  %v670_v36 = vpop.f32.mrf.mxu3  ;;  %1262 = vmatpush.bf16.msra.mxu1 %v2332_v27  ;;  %v2736_v55 = vld [vmem:[#allocation10 + $0xb4] sm:$0xf0] }
  0xf0   :  { %v697_v60 = vadd.f32 %v696_v56, %v683_v34  ;;  %1234 = vmatpush.bf16.msrb.mxu3 %v2328_v25  ;;  %v2735_v34 = vld [vmem:[#allocation10 + $0xb4] sm:$0xf]  ;;  %v2320_v9 = vor.u32 %v2736_v55, %v2319_v33  ;;  %v2241_v25 = vld [vmem:[#allocation10 + $0x18] sm:$0xf0]  ;;  %v2232_v55 = vor.u32 %v2714_v30, %v2231_v29 }
  0xf1   :  { %v671_v38 = vadd.f32 %v670_v36, %v657_v35  ;;  %v2321_v35 = vld [vmem:[#allocation10 + $0xb8] sm:$0xf0]  ;;  %v2722_v36 = vld [vmem:[#allocation10 + $0x44] sm:$0xf0]  ;;  %v2244_v27 = vor.u32 %v2715_v22, %v2241_v25 }
  0xf2   :  { %v707_v39 = vmul.f32 1.442695, %v697_v60  ;;  %vm702_vm4 = vcmp.gt.f32.partialorder %v697_v60, 0.0  ;;  %v2324_v56 = vor.u32 %v2735_v34, %v2321_v35  ;;  %v2233_v34 = vld [vmem:[#allocation10 + $0x8] sm:$0xf0] }
  0xf3   :  { %v685_v42 = vadd.f32 %v684_v40, %v671_v38  ;;  %v2721_v38 = vld [vmem:[#allocation10 + $0x44] sm:$0xf]  ;;  %v2236_v35 = vor.u32 %v2713_v31, %v2233_v34 }
  0xf4   :  { %2827 = vpow2.f32 %v707_v39  ;;  %v3190_v39 = vld [vmem:[%s3229_s4] sm:$0x3]  ;;  %1235 = vmatpush.bf16.msrb.mxu3 %v2320_v9  ;;  %1263 = vmatpush.bf16.msra.mxu1 %v2324_v56 }
  0xf5   :  { %v758_v54 = vperm.slane %v3190_v39, 1  ;;  %v757_v16 = vperm.slane %v3190_v39, 0 }
  0xf7   :  { %v698_v43 = vpop.f32.mrf.mxu1 }
  0xf8   :  { %v699_v41 = vadd.f32 %v698_v43, %v685_v42  ;;  %v2265_v42 = vld [vmem:[#allocation10 + $0x48] sm:$0xf0] }
  0xf9   :  { %v2268_v43 = vor.u32 %v2721_v38, %v2265_v42 }
  0xfa   :  { %v711_v44 = vmul.f32 1.442695, %v699_v41  ;;  %v2828_v45 = vpop.eup %2827  ;;  %vm704_vm5 = vcmp.gt.f32.partialorder %v699_v41, 0.0 }
  0xfb   :  { %v2090_v46 = vadd.f32 -1.0, %v2828_v45  ;;  %v2733_v45 = vld [vmem:[#allocation10 + $0xa4] sm:$0xf]  ;;  %1248 = vmatpush.bf16.msra.mxu0 %v2268_v43  ;;  %v2807_v43 = vld [vmem:[#allocation13 + $0x1ec] sm:$0xf0] }
  0xfc   :  { %2829 = vpow2.f32 %v711_v44  ;;  %v2734_v44 = vld [vmem:[#allocation10 + $0xa4] sm:$0xf0] }
  0xfd   :  { %v718_v49 = vsel %vm702_vm4, %v697_v60, %v2090_v46  ;;  %v2263_v60 = vld [vmem:[#allocation10 + $0x40] sm:$0xf] }
  0xfe   :  { %v2264_v40 = vor.u32 %v2722_v36, %v2263_v60 }
  0xff   :  { %1249 = vmatpush.bf16.msra.mxu0 %v2260_v59 }
 0x100   :  { %1220 = vmatpush.bf16.msrb.mxu2 %v2264_v40  ;;  %v2603_v40 = vld [vmem:[#allocation13 + $0x1e0] sm:$0xf] }
 0x102   :  { %v2830_v47 = vpop.eup %2829 }
 0x103   :  { %v2092_v48 = vadd.f32 -1.0, %v2830_v47  ;;  %v2313_v47 = vld [vmem:[#allocation10 + $0xa8] sm:$0xf0]  ;;  %1250 = vmatpush.bf16.msra.mxu0 %v2252_v12 }
 0x105   :  { %v720_v50 = vsel %vm704_vm5, %v699_v41, %v2092_v48  ;;  %v2311_v41 = vld [vmem:[#allocation10 + $0xa0] sm:$0xf] }
 0x106   :  { %v722_v51 = vpack.c.bf16 %v720_v50, %v718_v49  ;;  %v2312_v46 = vor.u32 %v2734_v44, %v2311_v41  ;;  %v2316_v49 = vor.u32 %v2733_v45, %v2313_v47  ;;  %v2255_v50 = vld [vmem:[#allocation10 + $0x30] sm:$0xf]  ;;  %v2805_v41 = vld [vmem:[#allocation13 + $0x1e4] sm:$0xf]  ;;  %v2604_v45 = vor.u32 %v2807_v43, %v2603_v40  ;;  %v2587_v47 = vld [vmem:[#allocation13 + $0x1c0] sm:$0xf] }
 0x107   :  { %1251 = vmatpush.bf16.msra.mxu0 %v2244_v27  ;;  %v2795_v40 = vld [vmem:[#allocation13 + $0x18c] sm:$0xf0] }
 0x108   :  { %943 = vmatmul.bf16.vlgmr.msra.gmra.mxu3 %v722_v51  ;;  %971 = vmatmul.bf16.vlgmr.msrb.gmra.mxu1 %v722_v51  ;;  %v2720_v51 = vld [vmem:[#allocation10 + $0x34] sm:$0xf0] }
 0x109   :  { %1236 = vmatpush.bf16.msrb.mxu3 %v2312_v46  ;;  %v2256_v57 = vor.u32 %v2720_v51, %v2255_v50  ;;  %1264 = vmatpush.bf16.msra.mxu1 %v2316_v49  ;;  %v2605_v46 = vld [vmem:[#allocation13 + $0x1f0] sm:$0xf0] }
 0x10a   :  { %v2608_v51 = vor.u32 %v2805_v41, %v2605_v46  ;;  %v2557_v41 = vld [vmem:[#allocation13 + $0x190] sm:$0xf0] }
 0x10b   :  { %1221 = vmatpush.bf16.msrb.mxu2 %v2256_v57  ;;  %1252 = vmatpush.bf16.msra.mxu0 %v2236_v35  ;;  %v2475_v57 = vld [vmem:[#allocation13 + $0xe0] sm:$0xf] }
 0x10c   :  { %v2476_v63 = vor.u32 %v2775_v61, %v2475_v57  ;;  %v2541_v57 = vld [vmem:[#allocation13 + $0x170] sm:$0xf0]  ;;  %v2427_v61 = vld [vmem:[#allocation13 + $0x80] sm:$0xf] }
 0x10d   :  { %1237 = vmatpush.bf16.msrb.mxu3 %v2304_v0  ;;  %1265 = vmatpush.bf16.msra.mxu1 %v2308_v2  ;;  %v2773_v0 = vld [vmem:[#allocation13 + $0xe4] sm:$0xf]  ;;  %v2571_v2 = vld [vmem:[#allocation13 + $0x1a0] sm:$0xf] }
 0x10f   :  { %1222 = vmatpush.bf16.msrb.mxu2 %v2248_v7  ;;  %v2799_v7 = vld [vmem:[#allocation13 + $0x1ac] sm:$0xf0] }
 0x110   :  { %v2572_v13 = vor.u32 %v2799_v7, %v2571_v2  ;;  %v2525_v7 = vld [vmem:[#allocation13 + $0x150] sm:$0xf0] }
 0x111   :  { %1238 = vmatpush.bf16.msrb.mxu3 %v2296_v18  ;;  %1266 = vmatpush.bf16.msra.mxu1 %v2300_v19  ;;  %v2460_v19 = vor.u32 %v2771_v15, %v2459_v14  ;;  %v2413_v14 = vld [vmem:[#allocation13 + $0x70] sm:$0xf0] }
 0x113   :  { %1223 = vmatpush.bf16.msrb.mxu2 %v2240_v24 }
 0x115   :  { %1703 = vmatpush.bf16.msra.mxu3 %v2604_v45  ;;  %1731 = vmatpush.bf16.msrb.mxu1 %v2608_v51  ;;  %v2767_v45 = vld [vmem:[#allocation13 + $0xac] sm:$0xf0] }
 0x117   :  { %1224 = vmatpush.bf16.msrb.mxu2 %v2232_v55 }
 0x11b   :  { %1689 = vmatpush.bf16.msra.mxu2 %v2476_v63 }
 0x11f   :  { %1690 = vmatpush.bf16.msra.mxu2 %v2460_v19  ;;  %v2509_v19 = vld [vmem:[#allocation13 + $0x130] sm:$0xf0] }
 0x164   :  { %v958_v48 = vpop.f32.mrf.mxu0 }
 0x165   :  { %v959_v6 = vadd.f32 %v958_v48, %v758_v54  ;;  %v2803_v48 = vld [vmem:[#allocation13 + $0x1cc] sm:$0xf0] }
 0x166   :  { %v2588_v59 = vor.u32 %v2803_v48, %v2587_v47  ;;  %v2765_v48 = vld [vmem:[#allocation13 + $0xa4] sm:$0xf] }
 0x168   :  { %1704 = vmatpush.bf16.msra.mxu3 %v2588_v59 }
 0x16a   :  { %v930_v10 = vpop.f32.mrf.mxu2 }
 0x16b   :  { %v931_v52 = vadd.f32 %v930_v10, %v757_v16  ;;  %v2797_v10 = vld [vmem:[#allocation13 + $0x1a4] sm:$0xf] }
 0x16c   :  { %v960_v26 = vpop.f32.mrf.mxu0  ;;  %1705 = vmatpush.bf16.msra.mxu3 %v2572_v13 }
 0x16d   :  { %v961_v32 = vadd.f32 %v960_v26, %v758_v54  ;;  %v2589_v54 = vld [vmem:[#allocation13 + $0x1d0] sm:$0xf0] }
 0x16e   :  { %v2592_v62 = vor.u32 %v2801_v53, %v2589_v54  ;;  %v2791_v53 = vld [vmem:[#allocation13 + $0x16c] sm:$0xf0]  ;;  %v2789_v54 = vld [vmem:[#allocation13 + $0x164] sm:$0xf] }
 0x16f   :  { %v2544_v59 = vor.u32 %v2789_v54, %v2541_v57  ;;  %v2776_v57 = vld [vmem:[#allocation13 + $0xf4] sm:$0xf0] }
 0x170   :  { %1732 = vmatpush.bf16.msrb.mxu1 %v2592_v62  ;;  %v2763_v62 = vld [vmem:[#allocation13 + $0x8c] sm:$0xf0] }
 0x171   :  { %v2428_v63 = vor.u32 %v2763_v62, %v2427_v61 }
 0x172   :  { %v932_v36 = vpop.f32.mrf.mxu2 }
 0x173   :  { %v933_v44 = vadd.f32 %v932_v36, %v757_v16  ;;  %v2769_v16 = vld [vmem:[#allocation13 + $0xc4] sm:$0xf] }
 0x174   :  { %v2464_v21 = vor.u32 %v2769_v16, %v2461_v20  ;;  %v2507_v16 = vld [vmem:[#allocation13 + $0x120] sm:$0xf] }
 0x185   :  { %v972_v11 = vpop.f32.mrf.mxu1 }
 0x186   :  { %v973_v17 = vadd.f32 %v972_v11, %v959_v6  ;;  %v2480_v6 = vor.u32 %v2773_v0, %v2477_v1  ;;  %v2573_v11 = vld [vmem:[#allocation13 + $0x1b0] sm:$0xf0]  ;;  %v2761_v0 = vld [vmem:[#allocation13 + $0x84] sm:$0xf] }
 0x187   :  { %v2576_v37 = vor.u32 %v2797_v10, %v2573_v11  ;;  %v2429_v1 = vld [vmem:[#allocation13 + $0x90] sm:$0xf0]  ;;  %v2411_v10 = vld [vmem:[#allocation13 + $0x60] sm:$0xf]  ;;  %v2759_v11 = vld [vmem:[#allocation13 + $0x6c] sm:$0xf0] }
 0x188   :  { %v983_v23 = vmul.f32 1.442695, %v973_v17  ;;  %vm978_vm6 = vcmp.gt.f32.partialorder %v973_v17, 0.0  ;;  %1717 = vmatpush.bf16.msrb.mxu0 %v2480_v6  ;;  %v2432_v2 = vor.u32 %v2761_v0, %v2429_v1  ;;  %v2412_v13 = vor.u32 %v2759_v11, %v2411_v10  ;;  %v2800_v0 = vld [vmem:[#allocation13 + $0x1b4] sm:$0xf0] }
 0x189   :  { %1733 = vmatpush.bf16.msrb.mxu1 %v2576_v37  ;;  %v2798_v1 = vld [vmem:[#allocation13 + $0x1ac] sm:$0xf]  ;;  %v2469_v10 = vld [vmem:[#allocation13 + $0xd8] sm:$0xf0] }
 0x18a   :  { %2831 = vpow2.f32 %v983_v23 }
 0x18b   :  { %v944_v28 = vpop.f32.mrf.mxu3 }
 0x18c   :  { %v945_v33 = vadd.f32 %v944_v28, %v931_v52  ;;  %1718 = vmatpush.bf16.msrb.mxu0 %v2464_v21  ;;  %v2395_v21 = vld [vmem:[#allocation13 + $0x40] sm:$0xf] }
 0x18d   :  { %v974_v9 = vpop.f32.mrf.mxu1 }
 0x18e   :  { %v981_v56 = vmul.f32 1.442695, %v945_v33  ;;  %v975_v60 = vadd.f32 %v974_v9, %v961_v32  ;;  %vm977_vm7 = vcmp.gt.f32.partialorder %v945_v33, 0.0 }
 0x190   :  { %v2832_v38 = vpop.eup %2831  ;;  %2833 = vpow2.f32 %v981_v56  ;;  %v987_v39 = vmul.f32 1.442695, %v975_v60  ;;  %vm980_vm8 = vcmp.gt.f32.partialorder %v975_v60, 0.0 }
 0x191   :  { %v2222_v42 = vadd.f32 -1.0, %v2832_v38 }
 0x192   :  { %2835 = vpow2.f32 %v987_v39  ;;  %v2555_v39 = vld [vmem:[#allocation13 + $0x180] sm:$0xf] }
 0x193   :  { %v3194_v49 = vsel %vm978_vm6, %v973_v17, %v2222_v42  ;;  %v946_v50 = vpop.f32.mrf.mxu3  ;;  %v2793_v42 = vld [vmem:[#allocation13 + $0x184] sm:$0xf]  ;;  %v2556_v43 = vor.u32 %v2795_v40, %v2555_v39 }
 0x194   :  { %v947_v58 = vadd.f32 %v946_v50, %v933_v44  ;;  %v1003_v4 = vmul.f32 1.442695, %v3194_v49  ;;  %vm998_vm10 = vcmp.gt.f32.partialorder %v3194_v49, 0.0  ;;  %v2443_v44 = vld [vmem:[#allocation13 + $0xa0] sm:$0xf]  ;;  %v2560_v46 = vor.u32 %v2793_v42, %v2557_v41 }
 0x195   :  { %v2444_v47 = vor.u32 %v2767_v45, %v2443_v44  ;;  %v2539_v50 = vld [vmem:[#allocation13 + $0x160] sm:$0xf]  ;;  %1706 = vmatpush.bf16.msra.mxu3 %v2556_v43  ;;  %v2595_v42 = vld [vmem:[#allocation13 + $0x1c8] sm:$0xf]  ;;  %v2804_v43 = vld [vmem:[#allocation13 + $0x1d4] sm:$0xf0] }
 0x196   :  { %v2834_v3 = vpop.eup %2833  ;;  %v985_v5 = vmul.f32 1.442695, %v947_v58  ;;  %vm979_vm9 = vcmp.gt.f32.partialorder %v947_v58, 0.0  ;;  %1734 = vmatpush.bf16.msrb.mxu1 %v2560_v46  ;;  %v2802_v41 = vld [vmem:[#allocation13 + $0x1cc] sm:$0xf]  ;;  %v2596_v44 = vor.u32 %v2804_v43, %v2595_v42 }
 0x197   :  { %v2221_v8 = vadd.f32 -1.0, %v2834_v3  ;;  %1691 = vmatpush.bf16.msra.mxu2 %v2444_v47  ;;  %v2523_v3 = vld [vmem:[#allocation13 + $0x140] sm:$0xf]  ;;  %v2597_v45 = vld [vmem:[#allocation13 + $0x1d8] sm:$0xf0] }
 0x198   :  { %v2836_v12 = vpop.eup %2835  ;;  %2837 = vpow2.f32 %v985_v5  ;;  %v2785_v5 = vld [vmem:[#allocation13 + $0x144] sm:$0xf]  ;;  %v2363_v46 = vld [vmem:[#allocation13] sm:$0xf]  ;;  %v2747_v47 = vld [vmem:[#allocation13 + $0xc] sm:$0xf0] }
 0x199   :  { %v993_v17 = vsel %vm977_vm7, %v945_v33, %v2221_v8  ;;  %v2224_v18 = vadd.f32 -1.0, %v2836_v12  ;;  %2839 = vpow2.f32 %v1003_v4  ;;  %v2787_v4 = vld [vmem:[#allocation13 + $0x14c] sm:$0xf0]  ;;  %v2528_v8 = vor.u32 %v2785_v5, %v2525_v7  ;;  %v2757_v12 = vld [vmem:[#allocation13 + $0x64] sm:$0xf] }
 0x19a   :  { %v1001_v23 = vmul.f32 1.442695, %v993_v17  ;;  %vm997_vm12 = vcmp.gt.f32.partialorder %v993_v17, 0.0  ;;  %1735 = vmatpush.bf16.msrb.mxu1 %v2544_v59  ;;  %v2524_v6 = vor.u32 %v2787_v4, %v2523_v3  ;;  %v2416_v15 = vor.u32 %v2757_v12, %v2413_v14  ;;  %v2485_v59 = vld [vmem:[#allocation13 + $0xf8] sm:$0xf0] }
 0x19b   :  { %v996_v22 = vsel %vm980_vm8, %v975_v60, %v2224_v18  ;;  %1692 = vmatpush.bf16.msra.mxu2 %v2428_v63  ;;  %v2781_v18 = vld [vmem:[#allocation13 + $0x124] sm:$0xf]  ;;  %v2579_v63 = vld [vmem:[#allocation13 + $0x1a8] sm:$0xf]  ;;  %v2581_v3 = vld [vmem:[#allocation13 + $0x1b8] sm:$0xf0] }
 0x19c   :  { %v1007_v24 = vmul.f32 1.442695, %v996_v22  ;;  %vm1000_vm11 = vcmp.gt.f32.partialorder %v996_v22, 0.0  ;;  %v2512_v20 = vor.u32 %v2781_v18, %v2509_v19  ;;  %v2584_v4 = vor.u32 %v2798_v1, %v2581_v3  ;;  %v2467_v5 = vld [vmem:[#allocation13 + $0xc8] sm:$0xf] }
 0x19d   :  { %v2770_v7 = vld [vmem:[#allocation13 + $0xcc] sm:$0xf]  ;;  %v2563_v12 = vld [vmem:[#allocation13 + $0x188] sm:$0xf]  ;;  %v2780_v3 = vld [vmem:[#allocation13 + $0x114] sm:$0xf0] }
 0x19e   :  { %v2838_v25 = vpop.eup %2837  ;;  %2841 = vpow2.f32 %v1007_v24  ;;  %1736 = vmatpush.bf16.msrb.mxu1 %v2528_v8  ;;  %v2472_v11 = vor.u32 %v2770_v7, %v2469_v10  ;;  %v2794_v14 = vld [vmem:[#allocation13 + $0x18c] sm:$0xf]  ;;  %v2451_v18 = vld [vmem:[#allocation13 + $0xa8] sm:$0xf] }
 0x19f   :  { %v2223_v26 = vadd.f32 -1.0, %v2838_v25  ;;  %v2840_v27 = vpop.eup %2839  ;;  %2843 = vpow2.f32 %v1001_v23  ;;  %1693 = vmatpush.bf16.msra.mxu2 %v2412_v13  ;;  %v2753_v23 = vld [vmem:[#allocation13 + $0x44] sm:$0xf]  ;;  %v2397_v25 = vld [vmem:[#allocation13 + $0x50] sm:$0xf0] }
 0x1a0   :  { %v2226_v29 = vadd.f32 -1.0, %v2840_v27  ;;  %v2491_v27 = vld [vmem:[#allocation13 + $0x100] sm:$0xf]  ;;  %v2796_v13 = vld [vmem:[#allocation13 + $0x194] sm:$0xf0] }
 0x1a1   :  { %v995_v52 = vsel %vm979_vm9, %v947_v58, %v2223_v26  ;;  %v2540_v58 = vor.u32 %v2791_v53, %v2539_v50  ;;  %v2400_v26 = vor.u32 %v2753_v23, %v2397_v25  ;;  %v2745_v50 = vld [vmem:[#allocation13 + $0x4] sm:$0xf]  ;;  %v2483_v53 = vld [vmem:[#allocation13 + $0xe8] sm:$0xf]  ;;  %v2766_v19 = vld [vmem:[#allocation13 + $0xac] sm:$0xf] }
 0x1a2   :  { %v1005_v28 = vmul.f32 1.442695, %v995_v52  ;;  %v1014_v33 = vsel %vm998_vm10, %v3194_v49, %v2226_v29  ;;  %vm999_vm13 = vcmp.gt.f32.partialorder %v995_v52, 0.0  ;;  %v2445_v49 = vld [vmem:[#allocation13 + $0xb0] sm:$0xf0]  ;;  %1737 = vmatpush.bf16.msrb.mxu1 %v2512_v20  ;;  %v2484_v61 = vor.u32 %v2776_v57, %v2483_v53 }
 0x1a3   :  { %v2448_v51 = vor.u32 %v2765_v48, %v2445_v49  ;;  %1707 = vmatpush.bf16.msra.mxu3 %v2540_v58  ;;  %v2600_v48 = vor.u32 %v2802_v41, %v2597_v45  ;;  %v2364_v49 = vor.u32 %v2747_v47, %v2363_v46  ;;  %v2774_v58 = vld [vmem:[#allocation13 + $0xec] sm:$0xf]  ;;  %v3199_v20 = vld [vmem:[#allocation11] sm:$0x3]  ;;  %v2792_v25 = vld [vmem:[#allocation13 + $0x174] sm:$0xf0] }
 0x1a4   :  { %v2842_v30 = vpop.eup %2841  ;;  %2845 = vpow2.f32 %v1005_v28  ;;  %v2777_v28 = vld [vmem:[#allocation13 + $0x104] sm:$0xf]  ;;  %v2488_v62 = vor.u32 %v2774_v58, %v2485_v59  ;;  %v2419_v43 = vld [vmem:[#allocation13 + $0x68] sm:$0xf]  ;;  %v2760_v41 = vld [vmem:[#allocation13 + $0x74] sm:$0xf0] }
 0x1a5   :  { %v2228_v31 = vadd.f32 -1.0, %v2842_v30  ;;  %v2844_v32 = vpop.eup %2843  ;;  %1719 = vmatpush.bf16.msrb.mxu0 %v2448_v51  ;;  %v2493_v30 = vld [vmem:[#allocation13 + $0x110] sm:$0xf0]  ;;  %v2420_v46 = vor.u32 %v2760_v41, %v2419_v43  ;;  %v2421_v47 = vld [vmem:[#allocation13 + $0x78] sm:$0xf0] }
 0x1a6   :  { %v2225_v9 = vadd.f32 -1.0, %v2844_v32  ;;  %v2808_v32 = vld [vmem:[#allocation13 + $0x1f4] sm:$0xf0]  ;;  %v2365_v51 = vld [vmem:[#allocation13 + $0x10] sm:$0xf0] }
 0x1a7   :  { %v1016_v55 = vsel %vm1000_vm11, %v996_v22, %v2228_v31  ;;  %1708 = vmatpush.bf16.msra.mxu3 %v2524_v6  ;;  %v2755_v22 = vld [vmem:[#allocation13 + $0x4c] sm:$0xf0]  ;;  %v2611_v31 = vld [vmem:[#allocation13 + $0x1e8] sm:$0xf]  ;;  %v2368_v54 = vor.u32 %v2745_v50, %v2365_v51  ;;  %v2772_v6 = vld [vmem:[#allocation13 + $0xd4] sm:$0xf0] }
 0x1a8   :  { %v1018_v34 = vpack.c.bf16 %v1016_v55, %v1014_v33  ;;  %v1013_v60 = vsel %vm997_vm12, %v993_v17, %v2225_v9  ;;  %v2783_v17 = vld [vmem:[#allocation13 + $0x12c] sm:$0xf0]  ;;  %v2396_v24 = vor.u32 %v2755_v22, %v2395_v21  ;;  %v2496_v33 = vor.u32 %v2777_v28, %v2493_v30  ;;  %v2613_v9 = vld [vmem:[#allocation13 + $0x1f8] sm:$0xf0]  ;;  %v2764_v30 = vld [vmem:[#allocation13 + $0x94] sm:$0xf0] }
 0x1a9   :  { %1720 = vmatpush.bf16.msrb.mxu0 %v2432_v2  ;;  %v2508_v37 = vor.u32 %v2783_v17, %v2507_v16  ;;  %v2612_v55 = vor.u32 %v2808_v32, %v2611_v31  ;;  %v2580_v2 = vor.u32 %v2800_v0, %v2579_v63  ;;  %v2468_v8 = vor.u32 %v2772_v6, %v2467_v5  ;;  %v2565_v16 = vld [vmem:[#allocation13 + $0x198] sm:$0xf0]  ;;  %v2762_v31 = vld [vmem:[#allocation13 + $0x8c] sm:$0xf]  ;;  %v2403_v57 = vld [vmem:[#allocation13 + $0x48] sm:$0xf] }
 0x1aa   :  { %v2846_v35 = vpop.eup %2845  ;;  %1239 = vmatmul.bf16.vlgmr.msrb.gmra.mxu3 %v1018_v34  ;;  %1267 = vmatmul.bf16.vlgmr.msra.gmra.mxu1 %v1018_v34  ;;  %v2806_v34 = vld [vmem:[#allocation13 + $0x1ec] sm:$0xf]  ;;  %v2568_v17 = vor.u32 %v2794_v14, %v2565_v16  ;;  %v2453_v22 = vld [vmem:[#allocation13 + $0xb8] sm:$0xf0]  ;;  %v1054_v32 = vperm.slane %v3199_v20, 1 }
 0x1ab   :  { %v2227_v56 = vadd.f32 -1.0, %v2846_v35  ;;  %1709 = vmatpush.bf16.msra.mxu3 %v2508_v37  ;;  %1694 = vmatpush.bf16.msra.mxu2 %v2396_v24  ;;  %v2379_v35 = vld [vmem:[#allocation13 + $0x20] sm:$0xf]  ;;  %v2768_v37 = vld [vmem:[#allocation13 + $0xb4] sm:$0xf0]  ;;  %v2456_v23 = vor.u32 %v2766_v19, %v2453_v22 }
 0x1ac   :  { %1738 = vmatpush.bf16.msrb.mxu1 %v2496_v33  ;;  %v2452_v21 = vor.u32 %v2768_v37, %v2451_v18  ;;  %v2547_v24 = vld [vmem:[#allocation13 + $0x168] sm:$0xf]  ;;  %v2782_v53 = vld [vmem:[#allocation13 + $0x12c] sm:$0xf]  ;;  %v2405_v63 = vld [vmem:[#allocation13 + $0x58] sm:$0xf0] }
 0x1ad   :  { %v1015_v36 = vsel %vm999_vm13, %v995_v52, %v2227_v56  ;;  %1721 = vmatpush.bf16.msrb.mxu0 %v2416_v15  ;;  %v2779_v52 = vld [vmem:[#allocation13 + $0x10c] sm:$0xf0]  ;;  %v2616_v56 = vor.u32 %v2806_v34, %v2613_v9  ;;  %v2564_v15 = vor.u32 %v2796_v13, %v2563_v12  ;;  %v2531_v9 = vld [vmem:[#allocation13 + $0x148] sm:$0xf]  ;;  %v2501_v6 = vld [vmem:[#allocation13 + $0x118] sm:$0xf0] }
 0x1ae   :  { %v1017_v38 = vpack.c.bf16 %v1015_v36, %v1013_v60  ;;  %v2492_v29 = vor.u32 %v2779_v52, %v2491_v27  ;;  %v2751_v60 = vld [vmem:[#allocation13 + $0x2c] sm:$0xf0]  ;;  %v2749_v36 = vld [vmem:[#allocation13 + $0x24] sm:$0xf]  ;;  %v2548_v27 = vor.u32 %v2792_v25, %v2547_v24  ;;  %v2549_v52 = vld [vmem:[#allocation13 + $0x178] sm:$0xf0] }
 0x1af   :  { %v2380_v39 = vor.u32 %v2751_v60, %v2379_v35  ;;  %v2788_v35 = vld [vmem:[#allocation13 + $0x154] sm:$0xf0]  ;;  %v1053_v60 = vperm.slane %v3199_v20, 0  ;;  %v2750_v13 = vld [vmem:[#allocation13 + $0x2c] sm:$0xf] }
 0x1b0   :  { %1225 = vmatmul.bf16.vlgmr.msrb.gmra.mxu2 %v1017_v38  ;;  %1253 = vmatmul.bf16.vlgmr.msra.gmra.mxu0 %v1017_v38  ;;  %v2381_v38 = vld [vmem:[#allocation13 + $0x30] sm:$0xf0]  ;;  %v2752_v12 = vld [vmem:[#allocation13 + $0x34] sm:$0xf0]  ;;  %v2389_v16 = vld [vmem:[#allocation13 + $0x38] sm:$0xf0] }
 0x1b1   :  { %1722 = vmatpush.bf16.msrb.mxu0 %v2400_v26  ;;  %1710 = vmatpush.bf16.msra.mxu3 %v2492_v29  ;;  %v2384_v40 = vor.u32 %v2749_v36, %v2381_v38  ;;  %v2790_v26 = vld [vmem:[#allocation13 + $0x16c] sm:$0xf]  ;;  %v2435_v29 = vld [vmem:[#allocation13 + $0x88] sm:$0xf]  ;;  %v2532_v36 = vor.u32 %v2788_v35, %v2531_v9  ;;  %v2533_v38 = vld [vmem:[#allocation13 + $0x158] sm:$0xf0]  ;;  %v2392_v37 = vor.u32 %v2750_v13, %v2389_v16 }
 0x1b2   :  { %1787 = vmatpush.bf16.msra.mxu1 %v2616_v56  ;;  %1695 = vmatpush.bf16.msra.mxu2 %v2380_v39  ;;  %v2552_v28 = vor.u32 %v2790_v26, %v2549_v52  ;;  %v2436_v33 = vor.u32 %v2764_v30, %v2435_v29  ;;  %v2786_v56 = vld [vmem:[#allocation13 + $0x14c] sm:$0xf]  ;;  %v2371_v24 = vld [vmem:[#allocation13 + $0x8] sm:$0xf]  ;;  %v2748_v25 = vld [vmem:[#allocation13 + $0x14] sm:$0xf0] }
 0x1b3   :  { %v2536_v42 = vor.u32 %v2786_v56, %v2533_v38  ;;  %v2746_v26 = vld [vmem:[#allocation13 + $0xc] sm:$0xf]  ;;  %v2372_v29 = vor.u32 %v2748_v25, %v2371_v24 }
 0x1b5   :  { %1759 = vmatpush.bf16.msrb.mxu3 %v2612_v55  ;;  %1723 = vmatpush.bf16.msrb.mxu0 %v2384_v40  ;;  %v2437_v55 = vld [vmem:[#allocation13 + $0x98] sm:$0xf0] }
 0x1b6   :  { %1788 = vmatpush.bf16.msra.mxu1 %v2600_v48  ;;  %1696 = vmatpush.bf16.msra.mxu2 %v2364_v49  ;;  %v2440_v34 = vor.u32 %v2762_v31, %v2437_v55  ;;  %v2515_v48 = vld [vmem:[#allocation13 + $0x128] sm:$0xf]  ;;  %v2784_v49 = vld [vmem:[#allocation13 + $0x134] sm:$0xf0] }
 0x1b7   :  { %v2516_v51 = vor.u32 %v2784_v49, %v2515_v48 }
 0x1b9   :  { %1760 = vmatpush.bf16.msrb.mxu3 %v2596_v44  ;;  %1724 = vmatpush.bf16.msrb.mxu0 %v2368_v54  ;;  %v2758_v44 = vld [vmem:[#allocation13 + $0x6c] sm:$0xf]  ;;  %v2517_v54 = vld [vmem:[#allocation13 + $0x138] sm:$0xf0] }
 0x1ba   :  { %1745 = vmatpush.bf16.msrb.mxu2 %v2484_v61  ;;  %1789 = vmatpush.bf16.msra.mxu1 %v2584_v4  ;;  %v2424_v50 = vor.u32 %v2758_v44, %v2421_v47  ;;  %v2520_v59 = vor.u32 %v2782_v53, %v2517_v54  ;;  %v2756_v61 = vld [vmem:[#allocation13 + $0x54] sm:$0xf0]  ;;  %v2778_v4 = vld [vmem:[#allocation13 + $0x10c] sm:$0xf] }
 0x1bb   :  { %v2404_v0 = vor.u32 %v2756_v61, %v2403_v57  ;;  %v2504_v10 = vor.u32 %v2778_v4, %v2501_v6 }
 0x1bd   :  { %1773 = vmatpush.bf16.msra.mxu0 %v2488_v62  ;;  %1761 = vmatpush.bf16.msrb.mxu3 %v2580_v2  ;;  %v2754_v62 = vld [vmem:[#allocation13 + $0x4c] sm:$0xf]  ;;  %v2499_v2 = vld [vmem:[#allocation13 + $0x108] sm:$0xf] }
 0x1be   :  { %1746 = vmatpush.bf16.msrb.mxu2 %v2468_v8  ;;  %1790 = vmatpush.bf16.msra.mxu1 %v2568_v17  ;;  %v2408_v1 = vor.u32 %v2754_v62, %v2405_v63  ;;  %v2500_v5 = vor.u32 %v2780_v3, %v2499_v2 }
 0x1c1   :  { %1774 = vmatpush.bf16.msra.mxu0 %v2472_v11  ;;  %1762 = vmatpush.bf16.msrb.mxu3 %v2564_v15  ;;  %v2387_v11 = vld [vmem:[#allocation13 + $0x28] sm:$0xf] }
 0x1c2   :  { %1747 = vmatpush.bf16.msrb.mxu2 %v2452_v21  ;;  %1791 = vmatpush.bf16.msra.mxu1 %v2552_v28  ;;  %v2388_v18 = vor.u32 %v2752_v12, %v2387_v11 }
 0x1c5   :  { %1775 = vmatpush.bf16.msra.mxu0 %v2456_v23  ;;  %1763 = vmatpush.bf16.msrb.mxu3 %v2548_v27  ;;  %v2373_v27 = vld [vmem:[#allocation13 + $0x18] sm:$0xf0] }
 0x1c6   :  { %1748 = vmatpush.bf16.msrb.mxu2 %v2436_v33  ;;  %1792 = vmatpush.bf16.msra.mxu1 %v2536_v42  ;;  %v2376_v31 = vor.u32 %v2746_v26, %v2373_v27 }
 0x1c9   :  { %1776 = vmatpush.bf16.msra.mxu0 %v2440_v34  ;;  %1764 = vmatpush.bf16.msrb.mxu3 %v2532_v36 }
 0x1ca   :  { %1749 = vmatpush.bf16.msrb.mxu2 %v2420_v46  ;;  %1793 = vmatpush.bf16.msra.mxu1 %v2520_v59  ;;  %v1359_v46 = vld [vmem:[%s3233_s8] sm:$0xf]  ;;  %s3070_s8 = smov [#allocation14]  }
 0x1cb   :  { %v1362_v49 = vperm.slane %v1359_v46, 1  ;;  %s1813_s18 = sshll.u32 %s3070_s8, 4  ;;  %s1814_s18 = int_to_ptr.vmem [resolvable:$true] %s1813_s18 }
 0x1cd   :  { %1777 = vmatpush.bf16.msra.mxu0 %v2424_v50  ;;  %1765 = vmatpush.bf16.msrb.mxu3 %v2516_v51  ;;  %v1361_v51 = vperm.slane %v1359_v46, 0 }
 0x1ce   :  { %1750 = vmatpush.bf16.msrb.mxu2 %v2404_v0  ;;  %1794 = vmatpush.bf16.msra.mxu1 %v2504_v10  ;;  %v1363_v10 = vperm.slane %v1359_v46, 2 }
 0x1d1   :  { %1778 = vmatpush.bf16.msra.mxu0 %v2408_v1  ;;  %1766 = vmatpush.bf16.msrb.mxu3 %v2500_v5 }
 0x1d2   :  { %1751 = vmatpush.bf16.msrb.mxu2 %v2388_v18 }
 0x1d5   :  { %1779 = vmatpush.bf16.msra.mxu0 %v2392_v37 }
 0x1d6   :  { %1752 = vmatpush.bf16.msrb.mxu2 %v2372_v29 }
 0x1d9   :  { %1780 = vmatpush.bf16.msra.mxu0 %v2376_v31 }
 0x227   :  { %v1268_v39 = vpop.f32.mrf.mxu1 }
 0x22d   :  { %v1254_v40 = vpop.f32.mrf.mxu0  ;;  %v1240_v7 = vpop.f32.mrf.mxu3 }
 0x22e   :  { %v1255_v45 = vadd.f32 %v1254_v40, %v1054_v32 }
 0x22f   :  { %v1270_v22 = vpop.f32.mrf.mxu1 }
 0x230   :  { %v3205_v58 = vadd.f32 %v1268_v39, %v1255_v45 }
 0x232   :  { %v1279_v14 = vmul.f32 1.442695, %v3205_v58  ;;  %vm1274_vm14 = vcmp.gt.f32.partialorder %v3205_v58, 0.0 }
 0x233   :  { %v1226_v8 = vpop.f32.mrf.mxu2 }
 0x234   :  { %v1227_v15 = vadd.f32 %v1226_v8, %v1053_v60  ;;  %2847 = vpow2.f32 %v1279_v14 }
 0x235   :  { %v1256_v17 = vpop.f32.mrf.mxu0  ;;  %v1242_v33 = vpop.f32.mrf.mxu3 }
 0x236   :  { %v1241_v19 = vadd.f32 %v1240_v7, %v1227_v15  ;;  %v1257_v21 = vadd.f32 %v1256_v17, %v1054_v32  ;;  %v1364_v7 = vperm.slane %v1359_v46, 3 }
 0x238   :  { %v1271_v23 = vadd.f32 %v1270_v22, %v1257_v21  ;;  %v1277_v52 = vmul.f32 1.442695, %v1241_v19  ;;  %vm1273_vm0 = vcmp.gt.f32.partialorder %v1241_v19, 0.0 }
 0x23a   :  { %v1283_v28 = vmul.f32 1.442695, %v1271_v23  ;;  %v2848_v55 = vpop.eup %2847  ;;  %vm1276_vm15 = vcmp.gt.f32.partialorder %v1271_v23, 0.0 }
 0x23b   :  { %v1228_v30 = vpop.f32.mrf.mxu2  ;;  %v2358_v35 = vadd.f32 -1.0, %v2848_v55 }
 0x23c   :  { %2849 = vpow2.f32 %v1283_v28  ;;  %v1229_v32 = vadd.f32 %v1228_v30, %v1053_v60 }
 0x23d   :  { %2851 = vpow2.f32 %v1277_v52  ;;  %v1290_v39 = vsel %vm1274_vm14, %v3205_v58, %v2358_v35 }
 0x23e   :  { %v1243_v34 = vadd.f32 %v1242_v33, %v1229_v32 }
 0x240   :  { %v1281_v9 = vmul.f32 1.442695, %v1243_v34  ;;  %vm1275_vm1 = vcmp.gt.f32.partialorder %v1243_v34, 0.0 }
 0x242   :  { %v2850_v56 = vpop.eup %2849  ;;  %2853 = vpow2.f32 %v1281_v9 }
 0x243   :  { %v2360_v36 = vadd.f32 -1.0, %v2850_v56  ;;  %v2852_v38 = vpop.eup %2851 }
 0x244   :  { %v2357_v60 = vadd.f32 -1.0, %v2852_v38 }
 0x245   :  { %v1292_v40 = vsel %vm1276_vm15, %v1271_v23, %v2360_v36 }
 0x246   :  { %v1294_v20 = vpack.c.bf16 %v1292_v40, %v1290_v39  ;;  %v1289_v41 = vsel %vm1273_vm0, %v1241_v19, %v2357_v60 }
 0x248   :  { %v2854_v42 = vpop.eup %2853  ;;  %1711 = vmatmul.bf16.vlgmr.msra.gmra.mxu3 %v1294_v20  ;;  %1739 = vmatmul.bf16.vlgmr.msrb.gmra.mxu1 %v1294_v20 }
 0x249   :  { %v2359_v43 = vadd.f32 -1.0, %v2854_v42 }
 0x24b   :  { %v1291_v44 = vsel %vm1275_vm1, %v1243_v34, %v2359_v43 }
 0x24c   :  { %v1293_v45 = vpack.c.bf16 %v1291_v44, %v1289_v41 }
 0x24e   :  { %1697 = vmatmul.bf16.vlgmr.msra.gmra.mxu2 %v1293_v45  ;;  %1725 = vmatmul.bf16.vlgmr.msrb.gmra.mxu0 %v1293_v45 }
 0x258   :  { %1767 = vmatmul.bf16.vlgmr.msrb.gmra.mxu3 %v1294_v20  ;;  %1795 = vmatmul.bf16.vlgmr.msra.gmra.mxu1 %v1294_v20 }
 0x25e   :  { %1753 = vmatmul.bf16.vlgmr.msrb.gmra.mxu2 %v1293_v45  ;;  %1781 = vmatmul.bf16.vlgmr.msra.gmra.mxu0 %v1293_v45 }
 0x2c5   :  { %v1740_v48 = vpop.f32.mrf.mxu1 }
 0x2cb   :  { %v1726_v47 = vpop.f32.mrf.mxu0  ;;  %v1712_v50 = vpop.f32.mrf.mxu3 }
 0x2cc   :  { %v1727_v53 = vadd.f32 %v1726_v47, %v1362_v49 }
 0x2cd   :  { %v1742_v62 = vpop.f32.mrf.mxu1 }
 0x2ce   :  { %v1741_v59 = vadd.f32 %v1740_v48, %v1727_v53 }
 0x2d1   :  { %v1698_v54 = vpop.f32.mrf.mxu2 }
 0x2d2   :  { %v1699_v57 = vadd.f32 %v1698_v54, %v1361_v51 }
 0x2d3   :  { %v1728_v58 = vpop.f32.mrf.mxu0  ;;  %v1714_v0 = vpop.f32.mrf.mxu3 }
 0x2d4   :  { %v1713_v61 = vadd.f32 %v1712_v50, %v1699_v57  ;;  %v1729_v1 = vadd.f32 %v1728_v58, %v1362_v49 }
 0x2d5   :  { %v1796_v11 = vpop.f32.mrf.mxu1 }
 0x2d6   :  { %v1801_v63 = vpack.c.bf16 %v1741_v59, %v1713_v61  ;;  %v1743_v5 = vadd.f32 %v1742_v62, %v1729_v1 }
 0x2d8   :  { %1805 = vst [vmem:[#allocation14] sm:$0xff] %v1801_v63 }
 0x2d9   :  { %v1700_v2 = vpop.f32.mrf.mxu2 }
 0x2da   :  { %v1701_v3 = vadd.f32 %v1700_v2, %v1361_v51 }
 0x2db   :  { %v1782_v4 = vpop.f32.mrf.mxu0  ;;  %v1768_v13 = vpop.f32.mrf.mxu3 }
 0x2dc   :  { %v1715_v6 = vadd.f32 %v1714_v0, %v1701_v3  ;;  %v1783_v12 = vadd.f32 %v1782_v4, %v1364_v7 }
 0x2dd   :  { %v1798_v23 = vpop.f32.mrf.mxu1 }
 0x2de   :  { %v1803_v8 = vpack.c.bf16 %v1743_v5, %v1715_v6  ;;  %v1797_v16 = vadd.f32 %v1796_v11, %v1783_v12 }
 0x2e0   :  { %1807 = vst [vmem:[#allocation14 + $0x10] sm:$0xff] %v1803_v8 }
 0x2e1   :  { %v1754_v14 = vpop.f32.mrf.mxu2 }
 0x2e2   :  { %v1755_v15 = vadd.f32 %v1754_v14, %v1363_v10 }
 0x2e3   :  { %v1784_v18 = vpop.f32.mrf.mxu0  ;;  %v1770_v24 = vpop.f32.mrf.mxu3 }
 0x2e4   :  { %v1769_v17 = vadd.f32 %v1768_v13, %v1755_v15  ;;  %v1785_v19 = vadd.f32 %v1784_v18, %v1364_v7 }
 0x2e6   :  { %v1802_v37 = vpack.c.bf16 %v1797_v16, %v1769_v17  ;;  %v1799_v25 = vadd.f32 %v1798_v23, %v1785_v19 }
 0x2e8   :  { %1806 = vst [vmem:[#allocation14 + $0x8] sm:$0xff] %v1802_v37 }
 0x2e9   :  { %v1756_v21 = vpop.f32.mrf.mxu2 }
 0x2ea   :  { %v1757_v22 = vadd.f32 %v1756_v21, %v1363_v10 }
 0x2ec   :  { %v1771_v26 = vadd.f32 %v1770_v24, %v1757_v22 }
 0x2ee   :  { %v1804_v27 = vpack.c.bf16 %v1799_v25, %v1771_v26 }
 0x2f0   :  { %1808 = vst [vmem:[#allocation14 + $0x18] sm:$0xff] %v1804_v27 }
 0x2f1   :  { %1821 = dma.vmem_to_hbm [thread:$0]  %s1814_s18, 512, %s1816_s26, [#allocation4], %s3068_s3, %s3068_s3, %s3069_s23  }
 0x2f2   :  { %3055 = dma.done.wait [#allocation4], 512  }
 0x2f3   :  { %3056 = vsyncadd [#allocation4], 4294966784 }
 0x2f4   :  { %1826 = vsyncpa [#allocation3], 1 }
 0x2f5   :  { %1827 = vsyncpa [#allocation6], 1 }
 0x2f6   :  { %1828 = vsyncpa [#allocation9], 1 }
 0x2f7   :  { %1829 = vsyncpa [#allocation12], 1 }
 0x2f8   :  { %1830 = vsyncpa [#allocation4], 1 }

</bundles_post_ra>
